<compile_context>
chip_gen: v5e
topology: v5e:2x2
jax: 0.10.0
libtpu: 0.0.40
codegen_flags: <defaults>
</compile_context>

<pallas_src>
import functools

import jax
import jax.numpy as jnp
from jax.experimental import pallas as pl
from jax.experimental.pallas import tpu as pltpu

D = 32              # logical model_dim
DP = 128            # lane-padded feature dim
NUM_LAYERS = 2      # minimum allowed by the module
BN_EPS = 1e-5
NUM_ATOM_FEATS = 9
ATOM_VOCAB = 10
NUM_BOND_FEATS = 3
BOND_VOCAB = 5
LANE = 128          # pad N / E / G to multiples of this (lane-dense operands)

_VMEM = pl.BlockSpec(memory_space=pltpu.MemorySpace.VMEM)
_SMEM = pl.BlockSpec(memory_space=pltpu.MemorySpace.SMEM)


def _round_up(x, m):
    return ((x + m - 1) // m) * m


# ----------------------------- fused Pallas kernel ---------------------------

def _fused_gnn_kernel(eps_ref,                       # SMEM (L,)               f32
                      h0_ref,                        # VMEM (Np,DP)            f32
                      eemb_ref,                      # VMEM (L,Ep,DP)          f32
                      vn0_ref,                       # VMEM (Gp,DP)            f32
                      row_ref,                       # VMEM (Ep,1)             i32
                      col_ref,                       # VMEM (1,Ep)             i32
                      batc_ref,                      # VMEM (Np,1)             i32
                      batr_ref,                      # VMEM (1,Np)             i32
                      gw_ref, gb_ref,                # VMEM (2L,DP,DP)bf16 (2L,1,DP)f32
                      vw_ref, vb_ref,                # VMEM (2(L-1),DP,DP)bf16 (2(L-1),1,DP)f32
                      out_ref):                      # VMEM (Np,DP)            f32
    f32 = jnp.float32
    bf16 = jnp.bfloat16
    np_ = h0_ref.shape[0]
    ep_ = eemb_ref.shape[1]
    gp_ = vn0_ref.shape[0]

    # In-kernel one-hot operators (built once, bf16 — exact for 0/1).
    # Padded node/edge/graph slots carry index -1 and therefore produce
    # all-zero rows/columns, so they contribute nothing to any dot.
    node_iota_e = jax.lax.broadcasted_iota(jnp.int32, (ep_, np_), 1)
    gsrc = jnp.where(row_ref[...] == node_iota_e, 1.0, 0.0).astype(bf16)   # (Ep,Np)
    node_iota_n = jax.lax.broadcasted_iota(jnp.int32, (np_, ep_), 0)
    sdstT = jnp.where(node_iota_n == col_ref[...], 1.0, 0.0).astype(bf16)  # (Np,Ep)
    graph_iota = jax.lax.broadcasted_iota(jnp.int32, (np_, gp_), 1)
    p = jnp.where(batc_ref[...] == graph_iota, 1.0, 0.0).astype(bf16)      # (Np,Gp)
    graph_iota_t = jax.lax.broadcasted_iota(jnp.int32, (gp_, np_), 0)
    pT = jnp.where(graph_iota_t == batr_ref[...], 1.0, 0.0).astype(bf16)   # (Gp,Np)

    h = h0_ref[...]
    vn = vn0_ref[...]

    for layer in range(NUM_LAYERS):
        # h_list[layer] = h_list[layer] + virtualnode_embedding[batch]
        h = h + jnp.dot(p, vn.astype(bf16), preferred_element_type=f32)

        # GINConv: (1+eps)*x + scatter_add(relu(gather(x, row) + e_emb), col)
        xj = jnp.dot(gsrc, h.astype(bf16), preferred_element_type=f32)     # (Ep,DP)
        msg = jnp.maximum(xj + eemb_ref[layer], 0.0)
        aggr = jnp.dot(sdstT, msg.astype(bf16), preferred_element_type=f32)
        z = (1.0 + eps_ref[layer]) * h + aggr

        # GIN MLP: Linear + (folded inner BN) + ReLU, then Linear + (folded
        # outer BatchNorm1d).  Dropout = identity (eval mode).
        z = jnp.maximum(
            jnp.dot(z.astype(bf16), gw_ref[2 * layer],
                    preferred_element_type=f32) + gb_ref[2 * layer], 0.0)
        z = (jnp.dot(z.astype(bf16), gw_ref[2 * layer + 1],
                     preferred_element_type=f32) + gb_ref[2 * layer + 1])
        if layer != NUM_LAYERS - 1:
            z = jnp.maximum(z, 0.0)

        # virtual-node update (all layers except the last); pooling uses the
        # PRE-conv h (h_list[layer]), matching the PyTorch module.
        if layer < NUM_LAYERS - 1:
            vn_tmp = jnp.dot(pT, h.astype(bf16), preferred_element_type=f32) + vn
            t = jnp.maximum(
                jnp.dot(vn_tmp.astype(bf16), vw_ref[2 * layer],
                        preferred_element_type=f32) + vb_ref[2 * layer], 0.0)
            vn = jnp.maximum(
                jnp.dot(t.astype(bf16), vw_ref[2 * layer + 1],
                        preferred_element_type=f32) + vb_ref[2 * layer + 1], 0.0)

        h = z

    out_ref[...] = h            # JK == 'last'


# ------------------------------ parameters -----------------------------------

def _bn_init(key):
    k1, k2, k3, k4 = jax.random.split(key, 4)
    gamma = 1.0 + 0.1 * jax.random.normal(k1, (D,), jnp.float32)
    beta = 0.1 * jax.random.normal(k2, (D,), jnp.float32)
    rmean = 0.1 * jax.random.normal(k3, (D,), jnp.float32)
    rvar = 0.5 + jax.random.uniform(k4, (D,), jnp.float32)
    return (gamma, beta, rmean, rvar)


def _linear_init(key, din, dout):
    k1, k2 = jax.random.split(key)
    w = 0.1 * jax.random.normal(k1, (dout, din), jnp.float32)
    b = 0.1 * jax.random.normal(k2, (dout,), jnp.float32)
    return w, b


def init_params(key):
    keys = jax.random.split(key, 96)
    ki = iter(keys)
    params = {}
    params["atom_emb"] = [
        0.1 * jax.random.normal(next(ki), (ATOM_VOCAB, D), jnp.float32)
        for _ in range(NUM_ATOM_FEATS)
    ]
    # torch.nn.init.constant_(virtualnode_embedding.weight, 0)
    params["vn_emb"] = jnp.zeros((1, D), jnp.float32)

    params["layers"] = []
    for _ in range(NUM_LAYERS):
        w1, b1 = _linear_init(next(ki), D, D)
        w2, b2 = _linear_init(next(ki), D, D)
        bond = [0.1 * jax.random.normal(next(ki), (BOND_VOCAB, D), jnp.float32)
                for _ in range(NUM_BOND_FEATS)]        # per-layer BondEncoder
        params["layers"].append(
            dict(
                gin_eps=jnp.float32(0.0),      # torch.Tensor([0])
                bond_emb=bond,
                mlp_w1=w1, mlp_b1=b1,
                mlp_bn=_bn_init(next(ki)),     # BN inside the GIN MLP
                mlp_w2=w2, mlp_b2=b2,
                bn=_bn_init(next(ki)),         # outer self.batch_norms[layer]
            )
        )

    params["vn_mlps"] = []
    for _ in range(NUM_LAYERS - 1):
        w1, b1 = _linear_init(next(ki), D, D)
        w2, b2 = _linear_init(next(ki), D, D)
        params["vn_mlps"].append(
            dict(w1=w1, b1=b1, bn1=_bn_init(next(ki)),
                 w2=w2, b2=b2, bn2=_bn_init(next(ki))))
    return params


def _fold_linear_bn(w, b, bn):
    """PyTorch Linear (w:(dout,din), b:(dout,)) followed by eval BatchNorm1d,
    folded into y = x @ A + c; A pre-transposed and zero-padded to (DP, DP)."""
    gamma, beta, mean, var = bn
    s = gamma / jnp.sqrt(var + BN_EPS)
    a = w.T * s[None, :]                       # (din, dout)
    c = s * b + (beta - s * mean)              # (dout,)
    a_p = jnp.zeros((DP, DP), jnp.float32).at[:a.shape[0], :a.shape[1]].set(a)
    c_p = jnp.zeros((1, DP), jnp.float32).at[0, :c.shape[0]].set(c)
    return a_p, c_p


def fold_params(params):
    """One-time init preprocessing: BN folding, transposition, D->DP padding,
    per-layer weight stacking (bf16 weights, f32 biases), fused embedding
    tables (atom table shared, bond table per layer)."""
    folded = {}
    atab = jnp.zeros((NUM_ATOM_FEATS * ATOM_VOCAB, DP), jnp.float32)
    for f in range(NUM_ATOM_FEATS):
        atab = atab.at[f * ATOM_VOCAB:(f + 1) * ATOM_VOCAB, :D].set(
            params["atom_emb"][f])
    folded["atom_table"] = atab

    btabs = []
    for lp in params["layers"]:
        btab = jnp.zeros((NUM_BOND_FEATS * BOND_VOCAB, DP), jnp.float32)
        for f in range(NUM_BOND_FEATS):
            btab = btab.at[f * BOND_VOCAB:(f + 1) * BOND_VOCAB, :D].set(
                lp["bond_emb"][f])
        btabs.append(btab)
    folded["bond_tables"] = jnp.stack(btabs)                  # (L, 15, DP)

    folded["vn_emb"] = jnp.zeros((1, DP), jnp.float32).at[:, :D].set(
        params["vn_emb"])

    gw, gb, eps = [], [], []
    for lp in params["layers"]:
        a1, c1 = _fold_linear_bn(lp["mlp_w1"], lp["mlp_b1"], lp["mlp_bn"])
        a2, c2 = _fold_linear_bn(lp["mlp_w2"], lp["mlp_b2"], lp["bn"])
        gw += [a1, a2]
        gb += [c1, c2]
        eps.append(lp["gin_eps"])
    folded["gin_w"] = jnp.stack(gw).astype(jnp.bfloat16)      # (2L, DP, DP) bf16
    folded["gin_b"] = jnp.stack(gb)                           # (2L, 1, DP)  f32
    folded["eps"] = jnp.asarray(eps, jnp.float32)             # (L,)

    vw, vb = [], []
    for vp in params["vn_mlps"]:
        a1, c1 = _fold_linear_bn(vp["w1"], vp["b1"], vp["bn1"])
        a2, c2 = _fold_linear_bn(vp["w2"], vp["b2"], vp["bn2"])
        vw += [a1, a2]
        vb += [c1, c2]
    folded["vn_w"] = jnp.stack(vw).astype(jnp.bfloat16)       # (2(L-1), DP, DP) bf16
    folded["vn_b"] = jnp.stack(vb)                            # (2(L-1), 1, DP)  f32
    return folded


# -------------------------------- forward ------------------------------------

@functools.partial(jax.jit, static_argnames=("num_graphs",))
def forward(folded, x_atom, edge_index, edge_attr, batch, *, num_graphs):
    n = x_atom.shape[0]
    e = edge_attr.shape[0]
    L = NUM_LAYERS
    # Lane-dense padding: all matmul minor / contraction dims become
    # multiples of 128 (also covers the 8/16 sublane requirements).
    np_ = max(_round_up(n, LANE), LANE)
    ep_ = max(_round_up(e, LANE), LANE)
    gp_ = max(_round_up(num_graphs, LANE), LANE)

    # AtomEncoder: single fused gather+sum over all 9 feature tables
    atom_idx = x_atom.astype(jnp.int32) + (
        jnp.arange(NUM_ATOM_FEATS, dtype=jnp.int32) * ATOM_VOCAB)[None, :]
    h0 = jnp.take(folded["atom_table"], atom_idx, axis=0).sum(axis=1)   # (N,DP)
    h0 = jnp.zeros((np_, DP), jnp.float32).at[:n].set(h0)

    # Per-layer BondEncoder on edge_attr[:, :3]: single fused gather+sum
    bond_idx = edge_attr[:, :NUM_BOND_FEATS].astype(jnp.int32) + (
        jnp.arange(NUM_BOND_FEATS, dtype=jnp.int32) * BOND_VOCAB)[None, :]
    eemb = jnp.take(folded["bond_tables"], bond_idx, axis=1).sum(axis=2)  # (L,E,DP)
    eemb = jnp.zeros((L, ep_, DP), jnp.float32).at[:, :e].set(eemb)

    # Index vectors only (padded slots = -1 -> all-zero one-hot rows in-kernel)
    row = jnp.full((ep_, 1), -1, jnp.int32).at[:e, 0].set(
        edge_index[0].astype(jnp.int32))
    col = jnp.full((1, ep_), -1, jnp.int32).at[0, :e].set(
        edge_index[1].astype(jnp.int32))
    bat_c = jnp.full((np_, 1), -1, jnp.int32).at[:n, 0].set(batch.astype(jnp.int32))
    bat_r = jnp.full((1, np_), -1, jnp.int32).at[0, :n].set(batch.astype(jnp.int32))

    vn0 = jnp.broadcast_to(folded["vn_emb"], (gp_, DP)).astype(jnp.float32)

    # Cost estimate (MXU dot flops only; no transcendentals in the kernel).
    dot_flops = (L * 2 * DP * (np_ * gp_ + 2 * ep_ * np_ + 2 * np_ * DP)
                 + (L - 1) * 2 * DP * (gp_ * np_ + 2 * gp_ * DP))
    in_bytes = (np_ * DP * 4 + L * ep_ * DP * 4 + gp_ * DP * 4
                + (2 * ep_ + 2 * np_) * 4
                + (2 * L) * DP * DP * 2 + (2 * L) * DP * 4
                + (2 * (L - 1)) * DP * DP * 2 + (2 * (L - 1)) * DP * 4)
    out_bytes = np_ * DP * 4
    cost = pl.CostEstimate(flops=int(dot_flops), transcendentals=0,
                           bytes_accessed=int(in_bytes + out_bytes))

    # VMEM budget: double-buffered I/O + in-kernel bf16 one-hots + f32 temps,
    # with headroom; clamped to stay inside v7x's 64 MiB physical VMEM.
    onehot_bytes = 2 * (ep_ * np_ + np_ * gp_) * 2
    temp_bytes = (6 * np_ + 3 * ep_ + 4 * gp_) * DP * 4
    vmem_bytes = int(min(max(2 * (in_bytes + out_bytes) + onehot_bytes
                             + temp_bytes + (8 << 20), 32 << 20), 64 << 20))

    out = pl.pallas_call(
        _fused_gnn_kernel,
        out_shape=jax.ShapeDtypeStruct((np_, DP), jnp.float32),
        in_specs=[_SMEM] + [_VMEM] * 11,
        out_specs=_VMEM,
        compiler_params=pltpu.CompilerParams(vmem_limit_bytes=vmem_bytes),
        cost_estimate=cost,
    )(folded["eps"], h0, eemb, vn0, row, col, bat_c, bat_r,
      folded["gin_w"], folded["gin_b"], folded["vn_w"], folded["vn_b"])

    return out[:n, :D]


# ---------------------------------- main --------------------------------------

if __name__ == "__main__":
    key = jax.random.PRNGKey(0)
    k_par, k_x, k_e0, k_e1, k_ea = jax.random.split(key, 5)

    params = init_params(k_par)
    folded = fold_params(params)      # BN folding / padding / stacking: once

    # Small synthetic batched graph: 2 graphs x 8 nodes, 12 edges each.
    N, G = 16, 2
    E_PER, E = 12, 24
    x_atom = jax.random.randint(k_x, (N, NUM_ATOM_FEATS), 0, ATOM_VOCAB,
                                dtype=jnp.int32)
    edge_attr = jax.random.randint(k_ea, (E, NUM_BOND_FEATS), 0, BOND_VOCAB,
                                   dtype=jnp.int32)
    # edges stay inside their own graph (graph0: nodes 0..7, graph1: 8..15)
    e0 = jax.random.randint(k_e0, (2, E_PER), 0, 8, dtype=jnp.int32)
    e1 = jax.random.randint(k_e1, (2, E_PER), 0, 8, dtype=jnp.int32) + 8
    edge_index = jnp.concatenate([e0, e1], axis=1)              # (2, E)
    batch = jnp.concatenate([jnp.zeros(8, jnp.int32),
                             jnp.ones(8, jnp.int32)])            # (N,)

    out = forward(folded, x_atom, edge_index, edge_attr, batch, num_graphs=G)
    out = jax.block_until_ready(out)
    assert out.shape == (N, D)
    assert bool(jnp.all(jnp.isfinite(out)))
    print("KERNEL_OK")
</pallas_src>

<mosaic_0001>
module attributes {stable_mosaic.version = 11 : i64} {
  func.func @_fused_gnn_kernel(%arg0: memref<2xf32, #tpu.memory_space<smem>>, %arg1: memref<128x128xf32, #tpu.memory_space<vmem>>, %arg2: memref<2x128x128xf32, #tpu.memory_space<vmem>>, %arg3: memref<128x128xf32, #tpu.memory_space<vmem>>, %arg4: memref<128x1xi32, #tpu.memory_space<vmem>>, %arg5: memref<1x128xi32, #tpu.memory_space<vmem>>, %arg6: memref<128x1xi32, #tpu.memory_space<vmem>>, %arg7: memref<1x128xi32, #tpu.memory_space<vmem>>, %arg8: memref<4x128x128xbf16, #tpu.memory_space<vmem>>, %arg9: memref<4x1x128xf32, #tpu.memory_space<vmem>>, %arg10: memref<2x128x128xbf16, #tpu.memory_space<vmem>>, %arg11: memref<2x1x128xf32, #tpu.memory_space<vmem>>, %arg12: memref<128x128xf32, #tpu.memory_space<vmem>>) attributes {dimension_semantics = [], scalar_prefetch = 0 : i64, scratch_operands = 0 : i64, tpu.core_type = #tpu.core_type<tc>} {
    %0 = tpu.iota {dimensions = array<i32: 1>} : vector<128x128xi32>
    %c0 = arith.constant 0 : index
    %c0_0 = arith.constant 0 : index
    %1 = vector.load %arg4[%c0, %c0_0] : memref<128x1xi32, #tpu.memory_space<vmem>>, vector<128x1xi32>
    %2 = vector.broadcast %1 : vector<128x1xi32> to vector<128x128xi32>
    %3 = arith.cmpi eq, %2, %0 : vector<128x128xi32>
    %cst = arith.constant 1.000000e+00 : f32
    %cst_1 = arith.constant 0.000000e+00 : f32
    %4 = vector.broadcast %cst : f32 to vector<128x128xf32>
    %5 = vector.broadcast %cst_1 : f32 to vector<128x128xf32>
    %6 = arith.select %3, %4, %5 : vector<128x128xi1>, vector<128x128xf32>
    %7 = arith.truncf %6 : vector<128x128xf32> to vector<128x128xbf16>
    %8 = tpu.iota {dimensions = array<i32: 0>} : vector<128x128xi32>
    %c0_2 = arith.constant 0 : index
    %c0_3 = arith.constant 0 : index
    %9 = vector.load %arg5[%c0_2, %c0_3] : memref<1x128xi32, #tpu.memory_space<vmem>>, vector<1x128xi32>
    %10 = vector.broadcast %9 : vector<1x128xi32> to vector<128x128xi32>
    %11 = arith.cmpi eq, %8, %10 : vector<128x128xi32>
    %cst_4 = arith.constant 1.000000e+00 : f32
    %cst_5 = arith.constant 0.000000e+00 : f32
    %12 = vector.broadcast %cst_4 : f32 to vector<128x128xf32>
    %13 = vector.broadcast %cst_5 : f32 to vector<128x128xf32>
    %14 = arith.select %11, %12, %13 : vector<128x128xi1>, vector<128x128xf32>
    %15 = arith.truncf %14 : vector<128x128xf32> to vector<128x128xbf16>
    %16 = tpu.iota {dimensions = array<i32: 1>} : vector<128x128xi32>
    %c0_6 = arith.constant 0 : index
    %c0_7 = arith.constant 0 : index
    %17 = vector.load %arg6[%c0_6, %c0_7] : memref<128x1xi32, #tpu.memory_space<vmem>>, vector<128x1xi32>
    %18 = vector.broadcast %17 : vector<128x1xi32> to vector<128x128xi32>
    %19 = arith.cmpi eq, %18, %16 : vector<128x128xi32>
    %cst_8 = arith.constant 1.000000e+00 : f32
    %cst_9 = arith.constant 0.000000e+00 : f32
    %20 = vector.broadcast %cst_8 : f32 to vector<128x128xf32>
    %21 = vector.broadcast %cst_9 : f32 to vector<128x128xf32>
    %22 = arith.select %19, %20, %21 : vector<128x128xi1>, vector<128x128xf32>
    %23 = arith.truncf %22 : vector<128x128xf32> to vector<128x128xbf16>
    %24 = tpu.iota {dimensions = array<i32: 0>} : vector<128x128xi32>
    %c0_10 = arith.constant 0 : index
    %c0_11 = arith.constant 0 : index
    %25 = vector.load %arg7[%c0_10, %c0_11] : memref<1x128xi32, #tpu.memory_space<vmem>>, vector<1x128xi32>
    %26 = vector.broadcast %25 : vector<1x128xi32> to vector<128x128xi32>
    %27 = arith.cmpi eq, %24, %26 : vector<128x128xi32>
    %cst_12 = arith.constant 1.000000e+00 : f32
    %cst_13 = arith.constant 0.000000e+00 : f32
    %28 = vector.broadcast %cst_12 : f32 to vector<128x128xf32>
    %29 = vector.broadcast %cst_13 : f32 to vector<128x128xf32>
    %30 = arith.select %27, %28, %29 : vector<128x128xi1>, vector<128x128xf32>
    %31 = arith.truncf %30 : vector<128x128xf32> to vector<128x128xbf16>
    %c0_14 = arith.constant 0 : index
    %c0_15 = arith.constant 0 : index
    %32 = vector.load %arg1[%c0_14, %c0_15] : memref<128x128xf32, #tpu.memory_space<vmem>>, vector<128x128xf32>
    %c0_16 = arith.constant 0 : index
    %c0_17 = arith.constant 0 : index
    %33 = vector.load %arg3[%c0_16, %c0_17] : memref<128x128xf32, #tpu.memory_space<vmem>>, vector<128x128xf32>
    %34 = arith.truncf %33 : vector<128x128xf32> to vector<128x128xbf16>
    %cst_18 = arith.constant dense<0.000000e+00> : vector<128x128xf32>
    %35 = tpu.matmul %23, %34, %cst_18 {dimension_numbers = #tpu.dot_dimension_numbers<[1], [0], [0], [1], [0, 0, 1, 1], [], []>} : vector<128x128xbf16>, vector<128x128xbf16>, vector<128x128xf32> -> vector<128x128xf32>
    %36 = arith.addf %32, %35 : vector<128x128xf32>
    %37 = arith.truncf %36 : vector<128x128xf32> to vector<128x128xbf16>
    %cst_19 = arith.constant dense<0.000000e+00> : vector<128x128xf32>
    %38 = tpu.matmul %7, %37, %cst_19 {dimension_numbers = #tpu.dot_dimension_numbers<[1], [0], [0], [1], [0, 0, 1, 1], [], []>} : vector<128x128xbf16>, vector<128x128xbf16>, vector<128x128xf32> -> vector<128x128xf32>
    %c0_20 = arith.constant 0 : index
    %c0_21 = arith.constant 0 : index
    %c0_22 = arith.constant 0 : index
    %39 = vector.load %arg2[%c0_20, %c0_21, %c0_22] : memref<2x128x128xf32, #tpu.memory_space<vmem>>, vector<1x128x128xf32>
    %40 = vector.shape_cast %39 : vector<1x128x128xf32> to vector<128x128xf32>
    %41 = arith.addf %38, %40 : vector<128x128xf32>
    %cst_23 = arith.constant 0.000000e+00 : f32
    %42 = vector.broadcast %cst_23 : f32 to vector<128x128xf32>
    %43 = arith.maximumf %41, %42 : vector<128x128xf32>
    %44 = arith.truncf %43 : vector<128x128xf32> to vector<128x128xbf16>
    %cst_24 = arith.constant dense<0.000000e+00> : vector<128x128xf32>
    %45 = tpu.matmul %15, %44, %cst_24 {dimension_numbers = #tpu.dot_dimension_numbers<[1], [0], [0], [1], [0, 0, 1, 1], [], []>} : vector<128x128xbf16>, vector<128x128xbf16>, vector<128x128xf32> -> vector<128x128xf32>
    %c0_25 = arith.constant 0 : index
    %46 = memref.load %arg0[%c0_25] : memref<2xf32, #tpu.memory_space<smem>>
    %cst_26 = arith.constant 1.000000e+00 : f32
    %47 = arith.addf %cst_26, %46 : f32
    %48 = vector.broadcast %47 : f32 to vector<128x128xf32>
    %49 = arith.mulf %48, %36 : vector<128x128xf32>
    %50 = arith.addf %49, %45 : vector<128x128xf32>
    %51 = arith.truncf %50 : vector<128x128xf32> to vector<128x128xbf16>
    %c0_27 = arith.constant 0 : index
    %c0_28 = arith.constant 0 : index
    %c0_29 = arith.constant 0 : index
    %52 = vector.load %arg8[%c0_27, %c0_28, %c0_29] : memref<4x128x128xbf16, #tpu.memory_space<vmem>>, vector<1x128x128xbf16>
    %53 = vector.shape_cast %52 : vector<1x128x128xbf16> to vector<128x128xbf16>
    %cst_30 = arith.constant dense<0.000000e+00> : vector<128x128xf32>
    %54 = tpu.matmul %51, %53, %cst_30 {dimension_numbers = #tpu.dot_dimension_numbers<[1], [0], [0], [1], [0, 0, 1, 1], [], []>} : vector<128x128xbf16>, vector<128x128xbf16>, vector<128x128xf32> -> vector<128x128xf32>
    %c0_31 = arith.constant 0 : index
    %c0_32 = arith.constant 0 : index
    %c0_33 = arith.constant 0 : index
    %55 = vector.load %arg9[%c0_31, %c0_32, %c0_33] : memref<4x1x128xf32, #tpu.memory_space<vmem>>, vector<1x1x128xf32>
    %56 = vector.shape_cast %55 : vector<1x1x128xf32> to vector<1x128xf32>
    %57 = vector.broadcast %56 : vector<1x128xf32> to vector<128x128xf32>
    %58 = arith.addf %54, %57 : vector<128x128xf32>
    %cst_34 = arith.constant 0.000000e+00 : f32
    %59 = vector.broadcast %cst_34 : f32 to vector<128x128xf32>
    %60 = arith.maximumf %58, %59 : vector<128x128xf32>
    %61 = arith.truncf %60 : vector<128x128xf32> to vector<128x128xbf16>
    %c1 = arith.constant 1 : index
    %c0_35 = arith.constant 0 : index
    %c0_36 = arith.constant 0 : index
    %62 = vector.load %arg8[%c1, %c0_35, %c0_36] : memref<4x128x128xbf16, #tpu.memory_space<vmem>>, vector<1x128x128xbf16>
    %63 = vector.shape_cast %62 : vector<1x128x128xbf16> to vector<128x128xbf16>
    %cst_37 = arith.constant dense<0.000000e+00> : vector<128x128xf32>
    %64 = tpu.matmul %61, %63, %cst_37 {dimension_numbers = #tpu.dot_dimension_numbers<[1], [0], [0], [1], [0, 0, 1, 1], [], []>} : vector<128x128xbf16>, vector<128x128xbf16>, vector<128x128xf32> -> vector<128x128xf32>
    %c1_38 = arith.constant 1 : index
    %c0_39 = arith.constant 0 : index
    %c0_40 = arith.constant 0 : index
    %65 = vector.load %arg9[%c1_38, %c0_39, %c0_40] : memref<4x1x128xf32, #tpu.memory_space<vmem>>, vector<1x1x128xf32>
    %66 = vector.shape_cast %65 : vector<1x1x128xf32> to vector<1x128xf32>
    %67 = vector.broadcast %66 : vector<1x128xf32> to vector<128x128xf32>
    %68 = arith.addf %64, %67 : vector<128x128xf32>
    %cst_41 = arith.constant 0.000000e+00 : f32
    %69 = vector.broadcast %cst_41 : f32 to vector<128x128xf32>
    %70 = arith.maximumf %68, %69 : vector<128x128xf32>
    %71 = arith.truncf %36 : vector<128x128xf32> to vector<128x128xbf16>
    %cst_42 = arith.constant dense<0.000000e+00> : vector<128x128xf32>
    %72 = tpu.matmul %31, %71, %cst_42 {dimension_numbers = #tpu.dot_dimension_numbers<[1], [0], [0], [1], [0, 0, 1, 1], [], []>} : vector<128x128xbf16>, vector<128x128xbf16>, vector<128x128xf32> -> vector<128x128xf32>
    %73 = arith.addf %72, %33 : vector<128x128xf32>
    %74 = arith.truncf %73 : vector<128x128xf32> to vector<128x128xbf16>
    %c0_43 = arith.constant 0 : index
    %c0_44 = arith.constant 0 : index
    %c0_45 = arith.constant 0 : index
    %75 = vector.load %arg10[%c0_43, %c0_44, %c0_45] : memref<2x128x128xbf16, #tpu.memory_space<vmem>>, vector<1x128x128xbf16>
    %76 = vector.shape_cast %75 : vector<1x128x128xbf16> to vector<128x128xbf16>
    %cst_46 = arith.constant dense<0.000000e+00> : vector<128x128xf32>
    %77 = tpu.matmul %74, %76, %cst_46 {dimension_numbers = #tpu.dot_dimension_numbers<[1], [0], [0], [1], [0, 0, 1, 1], [], []>} : vector<128x128xbf16>, vector<128x128xbf16>, vector<128x128xf32> -> vector<128x128xf32>
    %c0_47 = arith.constant 0 : index
    %c0_48 = arith.constant 0 : index
    %c0_49 = arith.constant 0 : index
    %78 = vector.load %arg11[%c0_47, %c0_48, %c0_49] : memref<2x1x128xf32, #tpu.memory_space<vmem>>, vector<1x1x128xf32>
    %79 = vector.shape_cast %78 : vector<1x1x128xf32> to vector<1x128xf32>
    %80 = vector.broadcast %79 : vector<1x128xf32> to vector<128x128xf32>
    %81 = arith.addf %77, %80 : vector<128x128xf32>
    %cst_50 = arith.constant 0.000000e+00 : f32
    %82 = vector.broadcast %cst_50 : f32 to vector<128x128xf32>
    %83 = arith.maximumf %81, %82 : vector<128x128xf32>
    %84 = arith.truncf %83 : vector<128x128xf32> to vector<128x128xbf16>
    %c1_51 = arith.constant 1 : index
    %c0_52 = arith.constant 0 : index
    %c0_53 = arith.constant 0 : index
    %85 = vector.load %arg10[%c1_51, %c0_52, %c0_53] : memref<2x128x128xbf16, #tpu.memory_space<vmem>>, vector<1x128x128xbf16>
    %86 = vector.shape_cast %85 : vector<1x128x128xbf16> to vector<128x128xbf16>
    %cst_54 = arith.constant dense<0.000000e+00> : vector<128x128xf32>
    %87 = tpu.matmul %84, %86, %cst_54 {dimension_numbers = #tpu.dot_dimension_numbers<[1], [0], [0], [1], [0, 0, 1, 1], [], []>} : vector<128x128xbf16>, vector<128x128xbf16>, vector<128x128xf32> -> vector<128x128xf32>
    %c1_55 = arith.constant 1 : index
    %c0_56 = arith.constant 0 : index
    %c0_57 = arith.constant 0 : index
    %88 = vector.load %arg11[%c1_55, %c0_56, %c0_57] : memref<2x1x128xf32, #tpu.memory_space<vmem>>, vector<1x1x128xf32>
    %89 = vector.shape_cast %88 : vector<1x1x128xf32> to vector<1x128xf32>
    %90 = vector.broadcast %89 : vector<1x128xf32> to vector<128x128xf32>
    %91 = arith.addf %87, %90 : vector<128x128xf32>
    %cst_58 = arith.constant 0.000000e+00 : f32
    %92 = vector.broadcast %cst_58 : f32 to vector<128x128xf32>
    %93 = arith.maximumf %91, %92 : vector<128x128xf32>
    %94 = arith.truncf %93 : vector<128x128xf32> to vector<128x128xbf16>
    %cst_59 = arith.constant dense<0.000000e+00> : vector<128x128xf32>
    %95 = tpu.matmul %23, %94, %cst_59 {dimension_numbers = #tpu.dot_dimension_numbers<[1], [0], [0], [1], [0, 0, 1, 1], [], []>} : vector<128x128xbf16>, vector<128x128xbf16>, vector<128x128xf32> -> vector<128x128xf32>
    %96 = arith.addf %70, %95 : vector<128x128xf32>
    %97 = arith.truncf %96 : vector<128x128xf32> to vector<128x128xbf16>
    %cst_60 = arith.constant dense<0.000000e+00> : vector<128x128xf32>
    %98 = tpu.matmul %7, %97, %cst_60 {dimension_numbers = #tpu.dot_dimension_numbers<[1], [0], [0], [1], [0, 0, 1, 1], [], []>} : vector<128x128xbf16>, vector<128x128xbf16>, vector<128x128xf32> -> vector<128x128xf32>
    %c1_61 = arith.constant 1 : index
    %c0_62 = arith.constant 0 : index
    %c0_63 = arith.constant 0 : index
    %99 = vector.load %arg2[%c1_61, %c0_62, %c0_63] : memref<2x128x128xf32, #tpu.memory_space<vmem>>, vector<1x128x128xf32>
    %100 = vector.shape_cast %99 : vector<1x128x128xf32> to vector<128x128xf32>
    %101 = arith.addf %98, %100 : vector<128x128xf32>
    %cst_64 = arith.constant 0.000000e+00 : f32
    %102 = vector.broadcast %cst_64 : f32 to vector<128x128xf32>
    %103 = arith.maximumf %101, %102 : vector<128x128xf32>
    %104 = arith.truncf %103 : vector<128x128xf32> to vector<128x128xbf16>
    %cst_65 = arith.constant dense<0.000000e+00> : vector<128x128xf32>
    %105 = tpu.matmul %15, %104, %cst_65 {dimension_numbers = #tpu.dot_dimension_numbers<[1], [0], [0], [1], [0, 0, 1, 1], [], []>} : vector<128x128xbf16>, vector<128x128xbf16>, vector<128x128xf32> -> vector<128x128xf32>
    %c1_66 = arith.constant 1 : index
    %106 = memref.load %arg0[%c1_66] : memref<2xf32, #tpu.memory_space<smem>>
    %cst_67 = arith.constant 1.000000e+00 : f32
    %107 = arith.addf %cst_67, %106 : f32
    %108 = vector.broadcast %107 : f32 to vector<128x128xf32>
    %109 = arith.mulf %108, %96 : vector<128x128xf32>
    %110 = arith.addf %109, %105 : vector<128x128xf32>
    %111 = arith.truncf %110 : vector<128x128xf32> to vector<128x128xbf16>
    %c2 = arith.constant 2 : index
    %c0_68 = arith.constant 0 : index
    %c0_69 = arith.constant 0 : index
    %112 = vector.load %arg8[%c2, %c0_68, %c0_69] : memref<4x128x128xbf16, #tpu.memory_space<vmem>>, vector<1x128x128xbf16>
    %113 = vector.shape_cast %112 : vector<1x128x128xbf16> to vector<128x128xbf16>
    %cst_70 = arith.constant dense<0.000000e+00> : vector<128x128xf32>
    %114 = tpu.matmul %111, %113, %cst_70 {dimension_numbers = #tpu.dot_dimension_numbers<[1], [0], [0], [1], [0, 0, 1, 1], [], []>} : vector<128x128xbf16>, vector<128x128xbf16>, vector<128x128xf32> -> vector<128x128xf32>
    %c2_71 = arith.constant 2 : index
    %c0_72 = arith.constant 0 : index
    %c0_73 = arith.constant 0 : index
    %115 = vector.load %arg9[%c2_71, %c0_72, %c0_73] : memref<4x1x128xf32, #tpu.memory_space<vmem>>, vector<1x1x128xf32>
    %116 = vector.shape_cast %115 : vector<1x1x128xf32> to vector<1x128xf32>
    %117 = vector.broadcast %116 : vector<1x128xf32> to vector<128x128xf32>
    %118 = arith.addf %114, %117 : vector<128x128xf32>
    %cst_74 = arith.constant 0.000000e+00 : f32
    %119 = vector.broadcast %cst_74 : f32 to vector<128x128xf32>
    %120 = arith.maximumf %118, %119 : vector<128x128xf32>
    %121 = arith.truncf %120 : vector<128x128xf32> to vector<128x128xbf16>
    %c3 = arith.constant 3 : index
    %c0_75 = arith.constant 0 : index
    %c0_76 = arith.constant 0 : index
    %122 = vector.load %arg8[%c3, %c0_75, %c0_76] : memref<4x128x128xbf16, #tpu.memory_space<vmem>>, vector<1x128x128xbf16>
    %123 = vector.shape_cast %122 : vector<1x128x128xbf16> to vector<128x128xbf16>
    %cst_77 = arith.constant dense<0.000000e+00> : vector<128x128xf32>
    %124 = tpu.matmul %121, %123, %cst_77 {dimension_numbers = #tpu.dot_dimension_numbers<[1], [0], [0], [1], [0, 0, 1, 1], [], []>} : vector<128x128xbf16>, vector<128x128xbf16>, vector<128x128xf32> -> vector<128x128xf32>
    %c3_78 = arith.constant 3 : index
    %c0_79 = arith.constant 0 : index
    %c0_80 = arith.constant 0 : index
    %125 = vector.load %arg9[%c3_78, %c0_79, %c0_80] : memref<4x1x128xf32, #tpu.memory_space<vmem>>, vector<1x1x128xf32>
    %126 = vector.shape_cast %125 : vector<1x1x128xf32> to vector<1x128xf32>
    %127 = vector.broadcast %126 : vector<1x128xf32> to vector<128x128xf32>
    %128 = arith.addf %124, %127 : vector<128x128xf32>
    %c0_81 = arith.constant 0 : index
    %c0_82 = arith.constant 0 : index
    %129 = vector.load %arg12[%c0_81, %c0_82] : memref<128x128xf32, #tpu.memory_space<vmem>>, vector<128x128xf32>
    tpu.vector_store %arg12[%c0_81, %c0_82], %128 {strides = array<i32>} : memref<128x128xf32, #tpu.memory_space<vmem>>, vector<128x128xf32>,
    return
  }
}

</mosaic_0001>

<bundles_post_ra>
// kernel: forward.1
= control target key start
LH: loop header
LB: loop body
LE: loop exit
PB: predicated region body
PF: predicated region fallthrough
CT: control target
= control target key end

     0   :  { %17 = vsyncpa [#allocation3], 0  ;;  %s2307_s24 = smov [#allocation2]   ;;  %s3550_s0 = inlined_call_operand.vmem [shape: f32[2], index: 0, kind: input, shape index: {}]   ;;  %s3551_s1 = inlined_call_operand.vmem [shape: f32[128,128], index: 1, kind: input, shape index: {}]   ;;  %s3552_s2 = inlined_call_operand.vmem [shape: f32[2,128,128], index: 2, kind: input, shape index: {}]   ;;  %s3553_s3 = inlined_call_operand.vmem [shape: f32[128,128], index: 3, kind: input, shape index: {}]   ;;  %s3554_s4 = inlined_call_operand.vmem [shape: s32[128,1], index: 4, kind: input, shape index: {}]   ;;  %s3555_s5 = inlined_call_operand.vmem [shape: s32[1,128], index: 5, kind: input, shape index: {}]   ;;  %s3556_s6 = inlined_call_operand.vmem [shape: s32[128,1], index: 6, kind: input, shape index: {}]   ;;  %s3557_s7 = inlined_call_operand.vmem [shape: s32[1,128], index: 7, kind: input, shape index: {}]   ;;  %s3558_s8 = inlined_call_operand.vmem [shape: bf16[4,128,128], index: 8, kind: input, shape index: {}]   ;;  %s3559_s9 = inlined_call_operand.vmem [shape: f32[4,1,128], index: 9, kind: input, shape index: {}]   ;;  %s3560_s10 = inlined_call_operand.vmem [shape: bf16[2,128,128], index: 10, kind: input, shape index: {}]   ;;  %s3561_s11 = inlined_call_operand.vmem [shape: f32[2,1,128], index: 11, kind: input, shape index: {}]   ;;  %s3562_s12 = inlined_call_operand.vmem [shape: f32[128,128], index: 12, kind: output, shape index: {}]  }
   0x1   :  { %s23_s23 = sshll.u32 %s3550_s0, 4  ;;  %s24_s23 = int_to_ptr.vmem [resolvable:$true] %s23_s23 }
   0x2   :  { %26 = dma.vmem_to_smem %s24_s23, 16, %s2307_s24, [#allocation3]  }
   0x3   :  { %2305 = dma.done.wait [#allocation3], 16  }
   0x4   :  { %2306 = vsyncadd [#allocation3], 4294967280 }
   0x5   :  { %53 = sfence }
   0x6   :  { %v233_v0 = vld [vmem:[%s3556_s6 + $0x70] sm:$0xff]  ;;  %v227_v1 = vld [vmem:[%s3556_s6 + $0x40] sm:$0xff]  ;;  %v2308_v3 = vmov 0   ;;  %v234_v4 = vld [vmem:[%s3556_s6 + $0x78] sm:$0xff]  ;;  %v54_v60 = vlaneseq  ;;  %s616_s22 = sld [smem:[#allocation2]] }
   0x7   :  { %v231_v2 = vld [vmem:[%s3556_s6 + $0x60] sm:$0xff]  ;;  %2280 = vset.pattern.permute.xlu2 %v2308_v3  ;;  %2279 = vset.pattern.permute.xlu1 %v2308_v3  ;;  %v228_v5 = vld [vmem:[%s3556_s6 + $0x48] sm:$0xff]  ;;  %v229_v7 = vld [vmem:[%s3556_s6 + $0x50] sm:$0xff]  ;;  %s2104_s24 = sld [smem:[#allocation2 + $0x1]] }
   0x8   :  { %2278 = vset.pattern.permute.xlu0 %v2308_v3  ;;  %278 = vperm.xlu2 %2280, %v233_v0   ;;  %v232_v6 = vld [vmem:[%s3556_s6 + $0x68] sm:$0xff]  ;;  %v223_v9 = vld [vmem:[%s3556_s6 + $0x20] sm:$0xff]  ;;  %v230_v12 = vld [vmem:[%s3556_s6 + $0x58] sm:$0xff]  ;;  %v2559_v62 = vand.u32 127, %v54_v60  ;;  %v3573_v3 = vmov 1.0|1.0  }
   0x9   :  { %260 = vperm.xlu1 %2279, %v227_v1   ;;  %272 = vperm.xlu0 %2278, %v231_v2   ;;  %v224_v8 = vld [vmem:[%s3556_s6 + $0x28] sm:$0xff]  ;;  %v219_v11 = vld [vmem:[%s3556_s6] sm:$0xff]  ;;  %v221_v13 = vld [vmem:[%s3556_s6 + $0x10] sm:$0xff]  ;;  %v3591_v1 = vmov 0  ;;  %v3594_v2 = vmov 0 }
   0xa   :  { %v220_v10 = vld [vmem:[%s3556_s6 + $0x8] sm:$0xff]  ;;  %v226_v14 = vld [vmem:[%s3556_s6 + $0x38] sm:$0xff]  ;;  %v225_v15 = vld [vmem:[%s3556_s6 + $0x30] sm:$0xff] }
   0xb   :  { %v57_v16 = vld [vmem:[%s3554_s4 + $0x8] sm:$0xff]  ;;  %v222_v17 = vld [vmem:[%s3556_s6 + $0x18] sm:$0xff]  ;;  %v56_v18 = vld [vmem:[%s3554_s4] sm:$0xff] }
   0xc   :  { %v60_v19 = vld [vmem:[%s3554_s4 + $0x20] sm:$0xff]  ;;  %v58_v20 = vld [vmem:[%s3554_s4 + $0x10] sm:$0xff]  ;;  %v59_v21 = vld [vmem:[%s3554_s4 + $0x18] sm:$0xff]  ;;  %s617_s23 = sadd.f32 1.0, %s616_s22 }
   0xd   :  { %v63_v22 = vld [vmem:[%s3554_s4 + $0x38] sm:$0xff]  ;;  %v61_v23 = vld [vmem:[%s3554_s4 + $0x28] sm:$0xff]  ;;  %v62_v24 = vld [vmem:[%s3554_s4 + $0x30] sm:$0xff] }
   0xe   :  { %v395_v25 = vld [vmem:[%s3553_s3 + $0x70] sm:$0xff]  ;;  %v396_v26 = vld [vmem:[%s3553_s3 + $0x78] sm:$0xff]  ;;  %v393_v27 = vld [vmem:[%s3553_s3 + $0x60] sm:$0xff] }
   0xf   :  { %v404_v28 = vpack.c.bf16 %v396_v26, %v395_v25  ;;  %v394_v29 = vld [vmem:[%s3553_s3 + $0x68] sm:$0xff]  ;;  %v66_v30 = vld [vmem:[%s3554_s4 + $0x50] sm:$0xff]  ;;  %v64_v31 = vld [vmem:[%s3554_s4 + $0x40] sm:$0xff] }
  0x10   :  { %281 = vperm.xlu2 %2280, %v234_v4   ;;  %v65_v32 = vld [vmem:[%s3554_s4 + $0x48] sm:$0xff]  ;;  %v403_v33 = vpack.c.bf16 %v394_v29, %v393_v27  ;;  %v2474_v34 = vld [vmem:[%s3553_s3 + $0x50] sm:$0xff]  ;;  %v2479_v35 = vld [vmem:[%s3553_s3 + $0x58] sm:$0xff] }
  0x11   :  { %263 = vperm.xlu1 %2279, %v228_v5   ;;  %275 = vperm.xlu0 %2278, %v232_v6   ;;  %v2484_v36 = vld [vmem:[%s3553_s3 + $0x40] sm:$0xff]  ;;  %v69_v37 = vld [vmem:[%s3554_s4 + $0x68] sm:$0xff]  ;;  %v402_v38 = vpack.c.bf16 %v2479_v35, %v2474_v34  ;;  %v67_v40 = vld [vmem:[%s3554_s4 + $0x58] sm:$0xff] }
  0x12   :  { %2252 = vmatpush.bf16.msra.mxu2 %v404_v28  ;;  %2253 = vmatpush.bf16.msra.mxu3 %v404_v28  ;;  %v2494_v39 = vld [vmem:[%s3553_s3 + $0x48] sm:$0xff]  ;;  %v68_v41 = vld [vmem:[%s3554_s4 + $0x60] sm:$0xff]  ;;  %v2507_v43 = vld [vmem:[%s3553_s3 + $0x30] sm:$0xff] }
  0x13   :  { %2251 = vmatpush.bf16.msra.mxu1 %v404_v28  ;;  %405 = vmatpush.bf16.msra.mxu0 %v404_v28  ;;  %v401_v42 = vpack.c.bf16 %v2494_v39, %v2484_v36  ;;  %v2512_v44 = vld [vmem:[%s3553_s3 + $0x38] sm:$0xff]  ;;  %v2519_v46 = vld [vmem:[%s3553_s3 + $0x20] sm:$0xff]  ;;  %v2524_v47 = vld [vmem:[%s3553_s3 + $0x28] sm:$0xff] }
  0x14   :  { %v400_v45 = vpack.c.bf16 %v2512_v44, %v2507_v43  ;;  %v70_v48 = vld [vmem:[%s3554_s4 + $0x70] sm:$0xff]  ;;  %v71_v49 = vld [vmem:[%s3554_s4 + $0x78] sm:$0xff]  ;;  %v399_v50 = vpack.c.bf16 %v2524_v47, %v2519_v46  ;;  %v2547_v53 = vld [vmem:[%s3553_s3] sm:$0xff] }
  0x15   :  { %v2537_v51 = vld [vmem:[%s3553_s3 + $0x10] sm:$0xff]  ;;  %v2542_v52 = vld [vmem:[%s3553_s3 + $0x18] sm:$0xff]  ;;  %v2554_v55 = vld [vmem:[%s3553_s3 + $0x8] sm:$0xff] }
  0x16   :  { %2255 = vmatpush.bf16.msra.mxu2 %v403_v33  ;;  %2256 = vmatpush.bf16.msra.mxu3 %v403_v33  ;;  %v398_v54 = vpack.c.bf16 %v2542_v52, %v2537_v51  ;;  %v397_v56 = vpack.c.bf16 %v2554_v55, %v2547_v53 }
  0x17   :  { %2254 = vmatpush.bf16.msra.mxu1 %v403_v33  ;;  %406 = vmatpush.bf16.msra.mxu0 %v403_v33 }
  0x18   :  { %266 = vperm.xlu2 %2280, %v229_v7   ;;  %v3597_v7 = vmov 0 }
  0x19   :  { %251 = vperm.xlu1 %2279, %v224_v8   ;;  %248 = vperm.xlu0 %2278, %v223_v9  }
  0x1a   :  { %2258 = vmatpush.bf16.msra.mxu2 %v402_v38  ;;  %2259 = vmatpush.bf16.msra.mxu3 %v402_v38 }
  0x1b   :  { %2257 = vmatpush.bf16.msra.mxu1 %v402_v38  ;;  %407 = vmatpush.bf16.msra.mxu0 %v402_v38 }
  0x1e   :  { %2261 = vmatpush.bf16.msra.mxu2 %v401_v42  ;;  %2262 = vmatpush.bf16.msra.mxu3 %v401_v42 }
  0x1f   :  { %2260 = vmatpush.bf16.msra.mxu1 %v401_v42  ;;  %408 = vmatpush.bf16.msra.mxu0 %v401_v42 }
  0x20   :  { %239 = vperm.xlu2 %2280, %v220_v10  }
  0x21   :  { %236 = vperm.xlu1 %2279, %v219_v11   ;;  %269 = vperm.xlu0 %2278, %v230_v12   ;;  %v3600_v11 = vmov 0 }
  0x22   :  { %2264 = vmatpush.bf16.msra.mxu2 %v400_v45  ;;  %2265 = vmatpush.bf16.msra.mxu3 %v400_v45 }
  0x23   :  { %2263 = vmatpush.bf16.msra.mxu1 %v400_v45  ;;  %409 = vmatpush.bf16.msra.mxu0 %v400_v45  ;;  %v375_v45 = vld [vmem:[%s3551_s1 + $0x50] sm:$0xff] }
  0x26   :  { %2267 = vmatpush.bf16.msra.mxu2 %v399_v50  ;;  %2268 = vmatpush.bf16.msra.mxu3 %v399_v50 }
  0x27   :  { %2266 = vmatpush.bf16.msra.mxu1 %v399_v50  ;;  %410 = vmatpush.bf16.msra.mxu0 %v399_v50 }
  0x28   :  { %242 = vperm.xlu2 %2280, %v221_v13   ;;  %v3605_v13 = vmov 0 }
  0x29   :  { %257 = vperm.xlu1 %2279, %v226_v14   ;;  %254 = vperm.xlu0 %2278, %v225_v15  }
  0x2a   :  { %2270 = vmatpush.bf16.msra.mxu2 %v398_v54  ;;  %2271 = vmatpush.bf16.msra.mxu3 %v398_v54 }
  0x2b   :  { %2269 = vmatpush.bf16.msra.mxu1 %v398_v54  ;;  %411 = vmatpush.bf16.msra.mxu0 %v398_v54 }
  0x2e   :  { %2273 = vmatpush.bf16.msra.mxu2 %v397_v56  ;;  %2274 = vmatpush.bf16.msra.mxu3 %v397_v56 }
  0x2f   :  { %2272 = vmatpush.bf16.msra.mxu1 %v397_v56  ;;  %412 = vmatpush.bf16.msra.mxu0 %v397_v56 }
  0x30   :  { %76 = vperm.xlu2 %2280, %v57_v16   ;;  %v3608_v16 = vmov 0 }
  0x31   :  { %245 = vperm.xlu0 %2278, %v222_v17   ;;  %73 = vperm.xlu1 %2279, %v56_v18  }
  0x38   :  { %85 = vperm.xlu2 %2280, %v60_v19   ;;  %v3611_v19 = vmov 0 }
  0x39   :  { %79 = vperm.xlu0 %2278, %v58_v20   ;;  %82 = vperm.xlu1 %2279, %v59_v21   ;;  %v373_v20 = vld [vmem:[%s3551_s1 + $0x40] sm:$0xff] }
  0x3a   :  { %v377_v21 = vld [vmem:[%s3551_s1 + $0x60] sm:$0xff] }
  0x40   :  { %94 = vperm.xlu2 %2280, %v63_v22  }
  0x41   :  { %88 = vperm.xlu0 %2278, %v61_v23   ;;  %91 = vperm.xlu1 %2279, %v62_v24   ;;  %v2639_v23 = vstv %s617_s23 }
  0x48   :  { %103 = vperm.xlu2 %2280, %v66_v30   ;;  %v374_v30 = vld [vmem:[%s3551_s1 + $0x48] sm:$0xff] }
  0x49   :  { %97 = vperm.xlu0 %2278, %v64_v31   ;;  %100 = vperm.xlu1 %2279, %v65_v32   ;;  %v378_v31 = vld [vmem:[%s3551_s1 + $0x68] sm:$0xff] }
  0x50   :  { %112 = vperm.xlu2 %2280, %v69_v37  }
  0x51   :  { %106 = vperm.xlu0 %2278, %v67_v40   ;;  %109 = vperm.xlu1 %2279, %v68_v41  }
  0x59   :  { %115 = vperm.xlu0 %2278, %v70_v48   ;;  %118 = vperm.xlu1 %2279, %v71_v49   ;;  %v379_v48 = vld [vmem:[%s3551_s1 + $0x70] sm:$0xff] }
  0x62   :  { %v279_v57 = vpop.permute.xlu2 %278 }
  0x63   :  { %vm297_vm9 = vcmp.eq.s32.totalorder %v279_v57, %v2559_v62 }
  0x6a   :  { %v282_v61 = vpop.permute.xlu2 %281 }
  0x6b   :  { %vm298_vm10 = vcmp.eq.s32.totalorder %v282_v61, %v2559_v62  ;;  %v376_v61 = vld [vmem:[%s3551_s1 + $0x58] sm:$0xff] }
  0x6c   :  { %vm2590_vm11 = vmpackc.low %vm298_vm10, %vm297_vm9 }
  0x6d   :  { %v3601_v11 = vsel %vm2590_vm11, 4294967295, %v3600_v11 }
  0x6e   :  { %3602 = vst [vmem:[#allocation8_spill] sm:$0xff] %v3601_v11 }
  0x72   :  { %v267_v4 = vpop.permute.xlu2 %266 }
  0x73   :  { %vm293_vm15 = vcmp.eq.s32.totalorder %v267_v4, %v2559_v62 }
  0x7a   :  { %v240_v8 = vpop.permute.xlu2 %239 }
  0x7b   :  { %v261_v58 = vpop.permute.xlu1 %260  ;;  %v273_v59 = vpop.permute.xlu0 %272  ;;  %vm284_vm12 = vcmp.eq.s32.totalorder %v240_v8, %v2559_v62 }
  0x7c   :  { %vm291_vm0 = vcmp.eq.s32.totalorder %v261_v58, %v2559_v62  ;;  %vm295_vm3 = vcmp.eq.s32.totalorder %v273_v59, %v2559_v62 }
  0x82   :  { %v243_v17 = vpop.permute.xlu2 %242 }
  0x83   :  { %v264_v63 = vpop.permute.xlu1 %263  ;;  %v276_v0 = vpop.permute.xlu0 %275 }
  0x84   :  { %vm292_vm1 = vcmp.eq.s32.totalorder %v264_v63, %v2559_v62  ;;  %vm296_vm2 = vcmp.eq.s32.totalorder %v276_v0, %v2559_v62  ;;  %v380_v63 = vld [vmem:[%s3551_s1 + $0x78] sm:$0xff] }
  0x85   :  { %vm2565_vm4 = vmpackc.low %vm292_vm1, %vm291_vm0 }
  0x86   :  { %v3592_v1 = vsel %vm2565_vm4, 4294967295, %v3591_v1  ;;  %vm2569_vm5 = vmpackc.low %vm296_vm2, %vm295_vm3  ;;  %1823 = vmatmul.msk.bf16.vlgmr.msra.gmra.mxu2 %vm2565_vm4, %v3573_v3 }
  0x87   :  { %3593 = vst [vmem:[#allocation5_spill] sm:$0xff] %v3592_v1  ;;  %v3595_v2 = vsel %vm2569_vm5, 4294967295, %v3594_v2  ;;  %1827 = vmatmul.msk.bf16.vlgmr.msra.gmra.mxu3 %vm2569_vm5, %v3573_v3  ;;  %v488_v1 = vld [vmem:[%s3552_s2 + $0x50] sm:$0xff] }
  0x88   :  { %3596 = vst [vmem:[#allocation6_spill] sm:$0xff] %v3595_v2  ;;  %v489_v2 = vld [vmem:[%s3552_s2 + $0x58] sm:$0xff] }
  0x8b   :  { %v252_v5 = vpop.permute.xlu1 %251  ;;  %v249_v6 = vpop.permute.xlu0 %248 }
  0x8c   :  { %vm288_vm6 = vcmp.eq.s32.totalorder %v252_v5, %v2559_v62  ;;  %vm287_vm7 = vcmp.eq.s32.totalorder %v249_v6, %v2559_v62 }
  0x8d   :  { %vm2581_vm8 = vmpackc.low %vm288_vm6, %vm287_vm7  ;;  %vm285_vm7 = vcmp.eq.s32.totalorder %v243_v17, %v2559_v62 }
  0x8e   :  { %v3598_v7 = vsel %vm2581_vm8, 4294967295, %v3597_v7  ;;  %1819 = vmatmul.msk.bf16.vlgmr.msra.gmra.mxu1 %vm2581_vm8, %v3573_v3 }
  0x8f   :  { %3599 = vst [vmem:[#allocation7_spill] sm:$0xff] %v3598_v7 }
  0x93   :  { %v237_v9 = vpop.permute.xlu1 %236  ;;  %v270_v10 = vpop.permute.xlu0 %269 }
  0x94   :  { %vm283_vm13 = vcmp.eq.s32.totalorder %v237_v9, %v2559_v62  ;;  %vm294_vm14 = vcmp.eq.s32.totalorder %v270_v10, %v2559_v62 }
  0x95   :  { %vm2598_vm0 = vmpackc.low %vm284_vm12, %vm283_vm13 }
  0x96   :  { %vm2602_vm1 = vmpackc.low %vm294_vm14, %vm293_vm15  ;;  %1815 = vmatmul.msk.bf16.vlgmr.msra.gmra.mxu0 %vm2598_vm0, %v3573_v3 }
  0x97   :  { %v3606_v13 = vsel %vm2602_vm1, 4294967295, %v3605_v13  ;;  %1825 = vmatmul.msk.bf16.gmra.mxu2 %vm2602_vm1, %v3573_v3  ;;  %1829 = vmatmul.msk.bf16.gmra.mxu3 %vm2590_vm11, %v3573_v3 }
  0x98   :  { %3607 = vst [vmem:[#allocation9_spill] sm:$0xff] %v3606_v13 }
  0x9b   :  { %v258_v14 = vpop.permute.xlu1 %257  ;;  %v255_v15 = vpop.permute.xlu0 %254 }
  0x9c   :  { %vm290_vm2 = vcmp.eq.s32.totalorder %v258_v14, %v2559_v62  ;;  %vm289_vm3 = vcmp.eq.s32.totalorder %v255_v15, %v2559_v62 }
  0x9d   :  { %vm2617_vm6 = vmpackc.low %vm290_vm2, %vm289_vm3 }
  0x9e   :  { %v3609_v16 = vsel %vm2617_vm6, 4294967295, %v3608_v16  ;;  %1821 = vmatmul.msk.bf16.gmra.mxu1 %vm2617_vm6, %v3573_v3 }
  0x9f   :  { %3610 = vst [vmem:[#allocation10_spill] sm:$0xff] %v3609_v16  ;;  %v487_v16 = vld [vmem:[%s3552_s2 + $0x48] sm:$0xff] }
  0xa3   :  { %v246_v18 = vpop.permute.xlu0 %245 }
  0xa4   :  { %vm286_vm9 = vcmp.eq.s32.totalorder %v246_v18, %v2559_v62 }
  0xa5   :  { %vm2626_vm10 = vmpackc.low %vm286_vm9, %vm285_vm7 }
  0xa6   :  { %v3612_v19 = vsel %vm2626_vm10, 4294967295, %v3611_v19  ;;  %1817 = vmatmul.msk.bf16.gmra.mxu0 %vm2626_vm10, %v3573_v3 }
  0xa7   :  { %3613 = vst [vmem:[#allocation11_spill] sm:$0xff] %v3612_v19 }
 0x109   :  { %v434_v22 = vpop.f32.mrf.mxu2 }
 0x10a   :  { %v462_v24 = vadd.f32 %v434_v22, %v373_v20  ;;  %v444_v25 = vpop.f32.mrf.mxu3 }
 0x10b   :  { %v466_v26 = vadd.f32 %v444_v25, %v377_v21  ;;  %v424_v29 = vpop.f32.mrf.mxu1  ;;  %v372_v21 = vld [vmem:[%s3551_s1 + $0x38] sm:$0xff]  ;;  %v371_v25 = vld [vmem:[%s3551_s1 + $0x30] sm:$0xff] }
 0x10c   :  { %v2642_v27 = vmul.f32 %v2639_v23, %v462_v24 }
 0x10d   :  { %v2645_v28 = vmul.f32 %v2639_v23, %v466_v26 }
 0x111   :  { %v436_v32 = vpop.f32.mrf.mxu2 }
 0x112   :  { %v463_v33 = vadd.f32 %v436_v32, %v374_v30  ;;  %v446_v37 = vpop.f32.mrf.mxu3 }
 0x113   :  { %v467_v38 = vadd.f32 %v446_v37, %v378_v31  ;;  %v414_v42 = vpop.f32.mrf.mxu0  ;;  %v426_v49 = vpop.f32.mrf.mxu1  ;;  %v369_v37 = vld [vmem:[%s3551_s1 + $0x20] sm:$0xff] }
 0x114   :  { %v2654_v40 = vmul.f32 %v2639_v23, %v463_v33  ;;  %v474_v31 = vpack.c.bf16 %v463_v33, %v462_v24  ;;  %v368_v24 = vld [vmem:[%s3551_s1 + $0x18] sm:$0xff] }
 0x115   :  { %v2657_v41 = vmul.f32 %v2639_v23, %v467_v38  ;;  %v476_v17 = vpack.c.bf16 %v467_v38, %v466_v26  ;;  %v370_v26 = vld [vmem:[%s3551_s1 + $0x28] sm:$0xff] }
 0x116   :  { %v2699_v38 = vadd.f32 %v426_v49, %v370_v26 }
 0x11a   :  { %v439_v50 = vpop.f32.mrf.mxu2  ;;  %v449_v54 = vpop.f32.mrf.mxu3 }
 0x11b   :  { %v464_v56 = vadd.f32 %v439_v50, %v375_v45  ;;  %v468_v57 = vadd.f32 %v449_v54, %v379_v48  ;;  %v416_v0 = vpop.f32.mrf.mxu0  ;;  %v429_v9 = vpop.f32.mrf.mxu1  ;;  %v2706_v48 = vadd.f32 %v424_v29, %v369_v37  ;;  %v367_v50 = vld [vmem:[%s3551_s1 + $0x10] sm:$0xff]  ;;  %v365_v29 = vld [vmem:[%s3551_s1] sm:$0xff]  ;;  %v3626_v37 = vmov 0 }
 0x11c   :  { %v2694_v32 = vadd.f32 %v429_v9, %v371_v25  ;;  %v3623_v25 = vmov 0 }
 0x11d   :  { %v2666_v58 = vmul.f32 %v2639_v23, %v464_v56  ;;  %v2669_v59 = vmul.f32 %v2639_v23, %v468_v57  ;;  %v472_v49 = vpack.c.bf16 %v2699_v38, %v2706_v48 }
 0x122   :  { %v441_v4 = vpop.f32.mrf.mxu2  ;;  %v451_v5 = vpop.f32.mrf.mxu3 }
 0x123   :  { %v465_v6 = vadd.f32 %v441_v4, %v376_v61  ;;  %v469_v8 = vadd.f32 %v451_v5, %v380_v63  ;;  %v419_v18 = vpop.f32.mrf.mxu0  ;;  %v431_v22 = vpop.f32.mrf.mxu1  ;;  %v2727_v5 = vadd.f32 %v414_v42, %v365_v29 }
 0x124   :  { %v2689_v30 = vadd.f32 %v431_v22, %v372_v21  ;;  %v74_v4 = vpop.permute.xlu1 %73  ;;  %v80_v42 = vpop.permute.xlu0 %79 }
 0x125   :  { %v477_v10 = vpack.c.bf16 %v469_v8, %v468_v57  ;;  %v2678_v14 = vmul.f32 %v2639_v23, %v465_v6  ;;  %v2681_v15 = vmul.f32 %v2639_v23, %v469_v8  ;;  %v475_v20 = vpack.c.bf16 %v465_v6, %v464_v56  ;;  %v366_v56 = vld [vmem:[%s3551_s1 + $0x8] sm:$0xff]  ;;  %v77_v6 = vpop.permute.xlu2 %76 }
 0x126   :  { %v473_v45 = vpack.c.bf16 %v2689_v30, %v2694_v32  ;;  %v2718_v57 = vadd.f32 %v419_v18, %v367_v50  ;;  %v2723_v61 = vadd.f32 %v416_v0, %v366_v56  ;;  %vm120_vm12 = vcmp.eq.s32.totalorder %v74_v4, %v2559_v62 }
 0x127   :  { %494 = vmatpush.bf16.msrb.mxu1 %v477_v10  ;;  %vm121_vm13 = vcmp.eq.s32.totalorder %v77_v6, %v2559_v62  ;;  %v3614_v0 = vmov 0  ;;  %vm122_vm15 = vcmp.eq.s32.totalorder %v80_v42, %v2559_v62  ;;  %v3632_v56 = vmov 0 }
 0x128   :  { %v470_v8 = vpack.c.bf16 %v2723_v61, %v2727_v5  ;;  %vm2733_vm14 = vmpackc.low %vm121_vm13, %vm120_vm12  ;;  %v3635_v4 = vmov 0 }
 0x129   :  { %v3615_v0 = vsel %vm2733_vm14, 4294967295, %v3614_v0 }
 0x12a   :  { %3616 = vst [vmem:[#allocation12_spill] sm:$0xff] %v3615_v0 }
 0x12b   :  { %495 = vmatpush.bf16.msrb.mxu1 %v476_v17  ;;  %v421_v33 = vpop.f32.mrf.mxu0 }
 0x12c   :  { %v2711_v54 = vadd.f32 %v421_v33, %v368_v24  ;;  %v83_v9 = vpop.permute.xlu1 %82  ;;  %v3629_v33 = vmov 0 }
 0x12d   :  { %vm123_vm2 = vcmp.eq.s32.totalorder %v83_v9, %v2559_v62  ;;  %v86_v18 = vpop.permute.xlu2 %85 }
 0x12e   :  { %v471_v63 = vpack.c.bf16 %v2711_v54, %v2718_v57  ;;  %vm2742_vm3 = vmpackc.low %vm123_vm2, %vm122_vm15  ;;  %vm124_vm9 = vcmp.eq.s32.totalorder %v86_v18, %v2559_v62 }
 0x12f   :  { %496 = vmatpush.bf16.msrb.mxu1 %v475_v20 }
 0x133   :  { %497 = vmatpush.bf16.msrb.mxu1 %v474_v31 }
 0x134   :  { %v92_v21 = vpop.permute.xlu1 %91 }
 0x135   :  { %v95_v22 = vpop.permute.xlu2 %94  ;;  %vm126_vm13 = vcmp.eq.s32.totalorder %v92_v21, %v2559_v62 }
 0x136   :  { %vm127_vm15 = vcmp.eq.s32.totalorder %v95_v22, %v2559_v62 }
 0x137   :  { %498 = vmatpush.bf16.msrb.mxu1 %v473_v45  ;;  %vm2760_vm2 = vmpackc.low %vm127_vm15, %vm126_vm13 }
 0x138   :  { %v3624_v25 = vsel %vm2760_vm2, 4294967295, %v3623_v25 }
 0x139   :  { %3625 = vst [vmem:[#allocation15_spill] sm:$0xff] %v3624_v25  ;;  %v490_v25 = vld [vmem:[%s3552_s2 + $0x60] sm:$0xff] }
 0x13b   :  { %499 = vmatpush.bf16.msrb.mxu1 %v472_v49 }
 0x13c   :  { %v101_v26 = vpop.permute.xlu1 %100 }
 0x13d   :  { %v104_v24 = vpop.permute.xlu2 %103 }
 0x13e   :  { %vm130_vm15 = vcmp.eq.s32.totalorder %v104_v24, %v2559_v62 }
 0x13f   :  { %500 = vmatpush.bf16.msrb.mxu1 %v471_v63 }
 0x143   :  { %501 = vmatpush.bf16.msrb.mxu1 %v470_v8 }
 0x144   :  { %v110_v50 = vpop.permute.xlu1 %109 }
 0x146   :  { %1831 = vmatmul.msk.bf16.vlgmr.msrb.gmra.mxu1 %vm2733_vm14, %v3573_v3 }
 0x147   :  { %935 = vmatpush.bf16.msra.mxu1 %v477_v10  ;;  %v3617_v10 = vmov 0 }
 0x148   :  { %v3618_v10 = vsel %vm2742_vm3, 4294967295, %v3617_v10 }
 0x149   :  { %3619 = vst [vmem:[#allocation13_spill] sm:$0xff] %v3618_v10 }
 0x14b   :  { %936 = vmatpush.bf16.msra.mxu1 %v476_v17  ;;  %v89_v17 = vpop.permute.xlu0 %88 }
 0x14c   :  { %vm125_vm7 = vcmp.eq.s32.totalorder %v89_v17, %v2559_v62 }
 0x14d   :  { %vm2751_vm12 = vmpackc.low %vm125_vm7, %vm124_vm9  ;;  %vm129_vm9 = vcmp.eq.s32.totalorder %v101_v26, %v2559_v62 }
 0x14f   :  { %937 = vmatpush.bf16.msra.mxu1 %v475_v20  ;;  %v3620_v20 = vmov 0 }
 0x150   :  { %v3621_v20 = vsel %vm2751_vm12, 4294967295, %v3620_v20 }
 0x151   :  { %3622 = vst [vmem:[#allocation14_spill] sm:$0xff] %v3621_v20 }
 0x153   :  { %938 = vmatpush.bf16.msra.mxu1 %v474_v31  ;;  %v98_v31 = vpop.permute.xlu0 %97 }
 0x154   :  { %vm128_vm7 = vcmp.eq.s32.totalorder %v98_v31, %v2559_v62 }
 0x156   :  { %1833 = vmatmul.msk.bf16.gmra.mxu1 %vm2742_vm3, %v3573_v3 }
 0x157   :  { %939 = vmatpush.bf16.msra.mxu1 %v473_v45 }
 0x15b   :  { %940 = vmatpush.bf16.msra.mxu1 %v472_v49  ;;  %v107_v45 = vpop.permute.xlu0 %106  ;;  %v113_v49 = vpop.permute.xlu2 %112 }
 0x15c   :  { %vm131_vm13 = vcmp.eq.s32.totalorder %v107_v45, %v2559_v62 }
 0x15f   :  { %941 = vmatpush.bf16.msra.mxu1 %v471_v63  ;;  %v119_v63 = vpop.permute.xlu1 %118 }
 0x163   :  { %942 = vmatpush.bf16.msra.mxu1 %v470_v8  ;;  %v116_v29 = vpop.permute.xlu0 %115 }
 0x166   :  { %1835 = vmatmul.msk.bf16.gmra.mxu1 %vm2751_vm12, %v3573_v3  ;;  %vm2769_vm12 = vmpackc.low %vm129_vm9, %vm128_vm7  ;;  %vm132_vm7 = vcmp.eq.s32.totalorder %v110_v50, %v2559_v62  ;;  %vm133_vm9 = vcmp.eq.s32.totalorder %v113_v49, %v2559_v62  ;;  %v2816_v50 = vshrl.u32 %v54_v60, 7 }
 0x167   :  { %v3627_v37 = vsel %vm2769_vm12, 4294967295, %v3626_v37 }
 0x168   :  { %3628 = vst [vmem:[#allocation16_spill] sm:$0xff] %v3627_v37  ;;  %v2847_v10 = vadd.s32 24, %v2816_v50 }
 0x176   :  { %1837 = vmatmul.msk.bf16.gmra.mxu1 %vm2760_vm2, %v3573_v3  ;;  %vm2778_vm2 = vmpackc.low %vm131_vm13, %vm130_vm15  ;;  %vm134_vm13 = vcmp.eq.s32.totalorder %v116_v29, %v2559_v62  ;;  %vm135_vm15 = vcmp.eq.s32.totalorder %v119_v63, %v2559_v62  ;;  %v2819_v29 = vadd.s32 8, %v2816_v50  ;;  %v2824_v63 = vld [vmem:[%s3557_s7] ss:$0 sm:$0xff] }
 0x177   :  { %v3630_v33 = vsel %vm2778_vm2, 4294967295, %v3629_v33 }
 0x178   :  { %3631 = vst [vmem:[#allocation17_spill] sm:$0xff] %v3630_v33  ;;  %v493_v33 = vld [vmem:[%s3552_s2 + $0x78] sm:$0xff] }
 0x186   :  { %1839 = vmatmul.msk.bf16.gmra.mxu1 %vm2769_vm12, %v3573_v3  ;;  %vm2787_vm12 = vmpackc.low %vm133_vm9, %vm132_vm7  ;;  %vm325_vm7 = vcmp.eq.s32.totalorder %v2816_v50, %v2824_v63  ;;  %vm326_vm9 = vcmp.eq.s32.totalorder %v2819_v29, %v2824_v63 }
 0x187   :  { %v3633_v56 = vsel %vm2787_vm12, 4294967295, %v3632_v56 }
 0x188   :  { %3634 = vst [vmem:[#allocation18_spill] sm:$0xff] %v3633_v56  ;;  %v491_v56 = vld [vmem:[%s3552_s2 + $0x68] sm:$0xff] }
 0x196   :  { %1841 = vmatmul.msk.bf16.gmra.mxu1 %vm2778_vm2, %v3573_v3  ;;  %vm2796_vm2 = vmpackc.low %vm135_vm15, %vm134_vm13 }
 0x197   :  { %v3636_v4 = vsel %vm2796_vm2, 4294967295, %v3635_v4  ;;  %vm1943_vm13 = vmpackc.low %vm326_vm9, %vm325_vm7  ;;  %vm328_vm7 = vcmp.eq.s32.totalorder %v2847_v10, %v2824_v63 }
 0x198   :  { %3637 = vst [vmem:[#allocation19_spill] sm:$0xff] %v3636_v4  ;;  %v492_v4 = vld [vmem:[%s3552_s2 + $0x70] sm:$0xff] }
 0x1a6   :  { %1843 = vmatmul.msk.bf16.gmra.mxu1 %vm2787_vm12, %v3573_v3 }
 0x1b6   :  { %1845 = vmatmul.msk.bf16.gmra.mxu1 %vm2796_vm2, %v3573_v3 }
 0x1c3   :  { %v2803_v6 = vpop.f32.mrf.mxu1 }
 0x1c6   :  { %1944 = vmatmul.msk.bf16.vlgmr.msra.gmra.mxu1 %vm1943_vm13, %v3573_v3  ;;  %v2844_v3 = vadd.s32 16, %v2816_v50 }
 0x1c8   :  { %vm327_vm15 = vcmp.eq.s32.totalorder %v2844_v3, %v2824_v63 }
 0x1c9   :  { %vm1945_vm9 = vmpackc.low %vm328_vm7, %vm327_vm15 }
 0x1cb   :  { %v2805_v8 = vpop.f32.mrf.mxu1 }
 0x1d3   :  { %v2807_v42 = vpop.f32.mrf.mxu1 }
 0x1db   :  { %v2809_v9 = vpop.f32.mrf.mxu1 }
 0x1e3   :  { %v2811_v17 = vpop.f32.mrf.mxu1 }
 0x1eb   :  { %v2813_v18 = vpop.f32.mrf.mxu1 }
 0x1f3   :  { %v518_v62 = vpop.f32.mrf.mxu1 }
 0x1fb   :  { %v520_v21 = vpop.f32.mrf.mxu1 }
 0x203   :  { %v523_v22 = vpop.f32.mrf.mxu1 }
 0x20b   :  { %v525_v31 = vpop.f32.mrf.mxu1 }
 0x213   :  { %v528_v26 = vpop.f32.mrf.mxu1 }
 0x214   :  { %v529_v7 = vadd.f32 %v528_v26, %v488_v1 }
 0x216   :  { %v553_v26 = vmax.f32 %v529_v7, 0.0 }
 0x21b   :  { %v530_v45 = vpop.f32.mrf.mxu1 }
 0x223   :  { %v533_v24 = vpop.f32.mrf.mxu1 }
 0x22b   :  { %v535_v49 = vpop.f32.mrf.mxu1 }
 0x22c   :  { %v536_v0 = vadd.f32 %v535_v49, %v491_v56  ;;  %v3638_v56 = vmov 1.0|1.0  }
 0x22d   :  { %1946 = vmatmul.msk.bf16.gmra.mxu1 %vm1945_vm9, %v3638_v56 }
 0x233   :  { %v538_v60 = vpop.f32.mrf.mxu1 }
 0x234   :  { %v539_v37 = vadd.f32 %v538_v60, %v492_v4  ;;  %v534_v4 = vadd.f32 %v533_v24, %v490_v25  ;;  %v526_v25 = vadd.f32 %v525_v31, %v487_v16 }
 0x236   :  { %v557_v60 = vmax.f32 %v539_v37, 0.0  ;;  %v555_v19 = vmax.f32 %v534_v4, 0.0  ;;  %v552_v31 = vmax.f32 %v526_v25, 0.0  ;;  %v483_v4 = vld [vmem:[%s3552_s2 + $0x28] sm:$0xff] }
 0x23b   :  { %v540_v20 = vpop.f32.mrf.mxu1 }
 0x23c   :  { %v541_v11 = vadd.f32 %v540_v20, %v493_v33  ;;  %v531_v20 = vadd.f32 %v530_v45, %v489_v2  ;;  %v556_v33 = vmax.f32 %v536_v0, 0.0  ;;  %v485_v2 = vld [vmem:[%s3552_s2 + $0x38] sm:$0xff]  ;;  %v2873_v0 = vadd.s32 40, %v2816_v50  ;;  %v484_v45 = vld [vmem:[%s3552_s2 + $0x30] sm:$0xff] }
 0x23d   :  { %v521_v16 = vadd.f32 %v520_v21, %v485_v2  ;;  %v516_v21 = vadd.f32 %v2813_v18, %v483_v4  ;;  %v479_v2 = vld [vmem:[%s3552_s2 + $0x8] sm:$0xff] }
 0x23e   :  { %v558_v13 = vmax.f32 %v541_v11, 0.0  ;;  %v486_v11 = vld [vmem:[%s3552_s2 + $0x40] sm:$0xff]  ;;  %v554_v37 = vmax.f32 %v531_v20, 0.0  ;;  %v565_v24 = vpack.c.bf16 %v556_v33, %v555_v19  ;;  %vm330_vm15 = vcmp.eq.s32.totalorder %v2873_v0, %v2824_v63 }
 0x23f   :  { %v524_v1 = vadd.f32 %v523_v22, %v486_v11  ;;  %v519_v22 = vadd.f32 %v518_v62, %v484_v45  ;;  %v550_v20 = vmax.f32 %v521_v16, 0.0  ;;  %v480_v62 = vld [vmem:[%s3552_s2 + $0x10] sm:$0xff]  ;;  %v548_v18 = vmax.f32 %v516_v21, 0.0 }
 0x240   :  { %v566_v49 = vpack.c.bf16 %v558_v13, %v557_v60  ;;  %v2870_v13 = vadd.s32 32, %v2816_v50  ;;  %v564_v19 = vpack.c.bf16 %v554_v37, %v553_v26  ;;  %v482_v60 = vld [vmem:[%s3552_s2 + $0x20] sm:$0xff]  ;;  %v506_v45 = vadd.f32 %v2805_v8, %v479_v2  ;;  %v2237_v2 = vld [vmem:[%s3558_s8 + $0x90] sm:$0xff] }
 0x241   :  { %v551_v7 = vmax.f32 %v524_v1, 0.0  ;;  %v514_v11 = vadd.f32 %v2811_v17, %v482_v60  ;;  %v549_v25 = vmax.f32 %v519_v22, 0.0  ;;  %v509_v1 = vadd.f32 %v2807_v42, %v480_v62  ;;  %v478_v17 = vld [vmem:[%s3552_s2] sm:$0xff] }
 0x242   :  { %567 = vmatpush.bf16.msrb.mxu2 %v566_v49  ;;  %vm329_vm13 = vcmp.eq.s32.totalorder %v2870_v13, %v2824_v63  ;;  %v481_v49 = vld [vmem:[%s3552_s2 + $0x18] sm:$0xff]  ;;  %v504_v4 = vadd.f32 %v2803_v6, %v478_v17  ;;  %v2912_v42 = vld [vmem:[%s3555_s5] ss:$0 sm:$0xff]  ;;  %v3639_v21 = vmov 0  ;;  %v176_v62 = vadd.s32 120, %v2816_v50  ;;  %s1489_s5 = sadd.f32 1.0, %s2104_s24 }
 0x243   :  { %v563_v33 = vpack.c.bf16 %v552_v31, %v551_v7  ;;  %vm1947_vm7 = vmpackc.low %vm330_vm15, %vm329_vm13  ;;  %v511_v37 = vadd.f32 %v2809_v9, %v481_v49  ;;  %v547_v26 = vmax.f32 %v514_v11, 0.0  ;;  %v167_v9 = vadd.s32 48, %v2816_v50  ;;  %v944_v17 = vpop.f32.mrf.mxu1 }
 0x244   :  { %1948 = vmatmul.msk.bf16.gmra.mxu1 %vm1947_vm7, %v3638_v56  ;;  %v545_v22 = vmax.f32 %v509_v1, 0.0  ;;  %v544_v7 = vmax.f32 %v506_v45, 0.0  ;;  %v543_v8 = vmax.f32 %v504_v4, 0.0  ;;  %vm179_vm15 = vcmp.eq.s32.totalorder %v2816_v50, %v2912_v42  ;;  %v2210_v1 = vld [vmem:[%s3558_s8 + $0x38] sm:$0xff]  ;;  %v2209_v45 = vld [vmem:[%s3558_s8 + $0x30] sm:$0xff]  ;;  %v2219_v4 = vld [vmem:[%s3560_s10] sm:$0xff] }
 0x245   :  { %v546_v16 = vmax.f32 %v511_v37, 0.0  ;;  %v561_v31 = vpack.c.bf16 %v548_v18, %v547_v26  ;;  %vm331_vm9 = vcmp.eq.s32.totalorder %v167_v9, %v2824_v63  ;;  %vm180_vm7 = vcmp.eq.s32.totalorder %v2819_v29, %v2912_v42  ;;  %v2226_v18 = vld [vmem:[%s3560_s10 + $0x38] sm:$0xff]  ;;  %727 = vmatpush.bf16.msrb.mxu3 %v2210_v1 }
 0x246   :  { %568 = vmatpush.bf16.msrb.mxu2 %v565_v24  ;;  %v562_v24 = vpack.c.bf16 %v550_v20, %v549_v25  ;;  %v559_v6 = vpack.c.bf16 %v544_v7, %v543_v8  ;;  %vm2920_vm12 = vmpackc.low %vm180_vm7, %vm179_vm15  ;;  %v169_v20 = vadd.s32 64, %v2816_v50  ;;  %v3641_v29 = vmov 0  ;;  %v2222_v26 = vld [vmem:[%s3560_s10 + $0x18] sm:$0xff]  ;;  %v2205_v8 = vld [vmem:[%s3558_s8 + $0x10] sm:$0xff] }
 0x247   :  { %v560_v60 = vpack.c.bf16 %v546_v16, %v545_v22  ;;  %v3640_v21 = vsel %vm2920_vm12, 4294967295, %v3639_v21  ;;  %v171_v49 = vadd.s32 80, %v2816_v50  ;;  %v172_v11 = vadd.s32 88, %v2816_v50  ;;  %v2221_v16 = vld [vmem:[%s3560_s10 + $0x10] sm:$0xff]  ;;  %v2238_v37 = vld [vmem:[%s3558_s8 + $0x98] sm:$0xff] }
 0x248   :  { %vm333_vm3 = vcmp.eq.s32.totalorder %v169_v20, %v2824_v63  ;;  %v174_v25 = vadd.s32 104, %v2816_v50  ;;  %v620_v1 = vmul.f32 %v2639_v23, %v2723_v61  ;;  %v622_v61 = vmul.f32 %v2639_v23, %v2711_v54 }
 0x249   :  { %vm335_vm7 = vcmp.eq.s32.totalorder %v171_v49, %v2824_v63  ;;  %728 = vmatpush.bf16.msrb.mxu3 %v2209_v45 }
 0x24a   :  { %569 = vmatpush.bf16.msrb.mxu2 %v564_v19  ;;  %v168_v19 = vadd.s32 56, %v2816_v50 }
 0x24b   :  { %v946_v22 = vpop.f32.mrf.mxu1 }
 0x24c   :  { %vm332_vm13 = vcmp.eq.s32.totalorder %v168_v19, %v2824_v63 }
 0x24d   :  { %vm1949_vm2 = vmpackc.low %vm332_vm13, %vm331_vm9  ;;  %vm181_vm9 = vcmp.eq.s32.totalorder %v2844_v3, %v2912_v42  ;;  %vm182_vm13 = vcmp.eq.s32.totalorder %v2847_v10, %v2912_v42  ;;  %v3643_v3 = vmov 0  ;;  %v173_v10 = vadd.s32 96, %v2816_v50 }
 0x24e   :  { %570 = vmatpush.bf16.msrb.mxu2 %v563_v33  ;;  %v170_v33 = vadd.s32 72, %v2816_v50 }
 0x250   :  { %vm334_vm14 = vcmp.eq.s32.totalorder %v170_v33, %v2824_v63 }
 0x251   :  { %vm1951_vm15 = vmpackc.low %vm334_vm14, %vm333_vm3  ;;  %vm183_vm14 = vcmp.eq.s32.totalorder %v2870_v13, %v2912_v42  ;;  %vm184_vm3 = vcmp.eq.s32.totalorder %v2873_v0, %v2912_v42  ;;  %v175_v0 = vadd.s32 112, %v2816_v50  ;;  %v2225_v50 = vld [vmem:[%s3560_s10 + $0x30] sm:$0xff]  ;;  %v2239_v13 = vld [vmem:[%s3558_s8 + $0xa0] sm:$0xff] }
 0x252   :  { %571 = vmatpush.bf16.msrb.mxu2 %v562_v24  ;;  %v2223_v24 = vld [vmem:[%s3560_s10 + $0x20] sm:$0xff] }
 0x254   :  { %1950 = vmatmul.msk.bf16.gmra.mxu1 %vm1949_vm2, %v3638_v56  ;;  %vm2936_vm2 = vmpackc.low %vm182_vm13, %vm181_vm9 }
 0x255   :  { %v3642_v29 = vsel %vm2936_vm2, 4294967295, %v3641_v29  ;;  %vm2952_vm13 = vmpackc.low %vm184_vm3, %vm183_vm14 }
 0x256   :  { %572 = vmatpush.bf16.msrb.mxu2 %v561_v31  ;;  %v3644_v3 = vsel %vm2952_vm13, 4294967295, %v3643_v3  ;;  %v2208_v31 = vld [vmem:[%s3558_s8 + $0x28] sm:$0xff] }
 0x257   :  { %729 = vmatpush.bf16.msrb.mxu3 %v2208_v31 }
 0x25a   :  { %573 = vmatpush.bf16.msrb.mxu2 %v560_v60  ;;  %v2206_v60 = vld [vmem:[%s3558_s8 + $0x18] sm:$0xff] }
 0x25e   :  { %574 = vmatpush.bf16.msrb.mxu2 %v559_v6 }
 0x261   :  { %1847 = vmatmul.msk.bf16.vlgmr.msrb.gmra.mxu2 %vm2920_vm12, %v3638_v56  ;;  %vm336_vm12 = vcmp.eq.s32.totalorder %v172_v11, %v2824_v63 }
 0x262   :  { %vm1953_vm9 = vmpackc.low %vm336_vm12, %vm335_vm7  ;;  %vm185_vm12 = vcmp.eq.s32.totalorder %v167_v9, %v2912_v42  ;;  %vm186_vm7 = vcmp.eq.s32.totalorder %v168_v19, %v2912_v42  ;;  %1060 = vmatpush.bf16.msra.mxu2 %v2226_v18  ;;  %v2220_v9 = vld [vmem:[%s3560_s10 + $0x8] sm:$0xff]  ;;  %v2207_v19 = vld [vmem:[%s3558_s8 + $0x20] sm:$0xff] }
 0x263   :  { %vm2966_vm3 = vmpackc.low %vm186_vm7, %vm185_vm12  ;;  %730 = vmatpush.bf16.msrb.mxu3 %v2207_v19 }
 0x264   :  { %1952 = vmatmul.msk.bf16.gmra.mxu1 %vm1951_vm15, %v3638_v56  ;;  %vm337_vm15 = vcmp.eq.s32.totalorder %v173_v10, %v2824_v63 }
 0x266   :  { %1061 = vmatpush.bf16.msra.mxu2 %v2225_v50 }
 0x267   :  { %731 = vmatpush.bf16.msrb.mxu3 %v2206_v60 }
 0x26b   :  { %732 = vmatpush.bf16.msrb.mxu3 %v2205_v8 }
 0x271   :  { %1849 = vmatmul.msk.bf16.gmra.mxu2 %vm2936_vm2, %v3638_v56  ;;  %vm338_vm2 = vcmp.eq.s32.totalorder %v174_v25, %v2824_v63 }
 0x272   :  { %vm1955_vm14 = vmpackc.low %vm338_vm2, %vm337_vm15  ;;  %vm187_vm2 = vcmp.eq.s32.totalorder %v169_v20, %v2912_v42  ;;  %vm188_vm15 = vcmp.eq.s32.totalorder %v170_v33, %v2912_v42  ;;  %v2204_v20 = vld [vmem:[%s3558_s8 + $0x8] sm:$0xff]  ;;  %v2203_v33 = vld [vmem:[%s3558_s8] sm:$0xff] }
 0x273   :  { %vm2980_vm7 = vmpackc.low %vm188_vm15, %vm187_vm2  ;;  %vm191_vm2 = vcmp.eq.s32.totalorder %v173_v10, %v2912_v42  ;;  %vm192_vm15 = vcmp.eq.s32.totalorder %v174_v25, %v2912_v42  ;;  %733 = vmatpush.bf16.msrb.mxu3 %v2204_v20  ;;  %v945_v25 = vadd.f32 %v944_v17, %v2547_v53 }
 0x274   :  { %1954 = vmatmul.msk.bf16.gmra.mxu1 %vm1953_vm9, %v3638_v56  ;;  %vm339_vm9 = vcmp.eq.s32.totalorder %v175_v0, %v2824_v63 }
 0x277   :  { %734 = vmatpush.bf16.msrb.mxu3 %v2203_v33 }
 0x281   :  { %1851 = vmatmul.msk.bf16.gmra.mxu2 %vm2952_vm13, %v3638_v56  ;;  %vm340_vm13 = vcmp.eq.s32.totalorder %v176_v62, %v2824_v63  ;;  %v2224_v63 = vld [vmem:[%s3560_s10 + $0x28] sm:$0xff] }
 0x282   :  { %vm1957_vm12 = vmpackc.low %vm340_vm13, %vm339_vm9  ;;  %1062 = vmatpush.bf16.msra.mxu2 %v2224_v63  ;;  %vm189_vm13 = vcmp.eq.s32.totalorder %v171_v49, %v2912_v42  ;;  %v619_v63 = vmul.f32 %v2639_v23, %v2727_v5  ;;  %v621_v5 = vmul.f32 %v2639_v23, %v2718_v57 }
 0x284   :  { %1956 = vmatmul.msk.bf16.gmra.mxu1 %vm1955_vm14, %v3638_v56  ;;  %vm190_vm14 = vcmp.eq.s32.totalorder %v172_v11, %v2912_v42 }
 0x285   :  { %vm3002_vm9 = vmpackc.low %vm190_vm14, %vm189_vm13  ;;  %vm193_vm13 = vcmp.eq.s32.totalorder %v175_v0, %v2912_v42  ;;  %vm194_vm14 = vcmp.eq.s32.totalorder %v176_v62, %v2912_v42  ;;  %v947_v0 = vadd.f32 %v946_v22, %v2554_v55 }
 0x286   :  { %1063 = vmatpush.bf16.msra.mxu2 %v2223_v24 }
 0x287   :  { %v984_v42 = vpack.c.bf16 %v947_v0, %v945_v25 }
 0x28a   :  { %1064 = vmatpush.bf16.msra.mxu2 %v2222_v26 }
 0x28e   :  { %1065 = vmatpush.bf16.msra.mxu2 %v2221_v16 }
 0x291   :  { %1853 = vmatmul.msk.bf16.gmra.mxu2 %vm2966_vm3, %v3638_v56 }
 0x292   :  { %1066 = vmatpush.bf16.msra.mxu2 %v2220_v9 }
 0x294   :  { %1958 = vmatmul.msk.bf16.gmra.mxu1 %vm1957_vm12, %v3638_v56  ;;  %vm3035_vm12 = vmpackc.low %vm192_vm15, %vm191_vm2  ;;  %vm3678_vm15 = vnez %v3640_v21  ;;  %v2242_v21 = vld [vmem:[%s3558_s8 + $0xb8] sm:$0xff] }
 0x295   :  { %vm3056_vm2 = vmpackc.low %vm194_vm14, %vm193_vm13  ;;  %vm3679_vm13 = vnez %v3642_v29  ;;  %vm3680_vm14 = vnez %v3644_v3  ;;  %v2241_v29 = vld [vmem:[%s3558_s8 + $0xb0] sm:$0xff]  ;;  %v2240_v3 = vld [vmem:[%s3558_s8 + $0xa8] sm:$0xff] }
 0x296   :  { %1067 = vmatpush.bf16.msra.mxu2 %v2219_v4 }
 0x2a1   :  { %1855 = vmatmul.msk.bf16.gmra.mxu2 %vm2980_vm7, %v3638_v56 }
 0x2aa   :  { %v949_v6 = vpop.f32.mrf.mxu1 }
 0x2ab   :  { %v950_v50 = vadd.f32 %v949_v6, %v2537_v51 }
 0x2b1   :  { %1857 = vmatmul.msk.bf16.gmra.mxu2 %vm3002_vm9, %v3638_v56 }
 0x2b2   :  { %v951_v11 = vpop.f32.mrf.mxu1 }
 0x2b3   :  { %v952_v24 = vadd.f32 %v951_v11, %v2542_v52 }
 0x2b5   :  { %v985_v55 = vpack.c.bf16 %v952_v24, %v950_v50 }
 0x2c1   :  { %1859 = vmatmul.msk.bf16.gmra.mxu2 %vm3035_vm12, %v3638_v56  ;;  %v954_v10 = vpop.f32.mrf.mxu1 }
 0x2c2   :  { %v955_v51 = vadd.f32 %v954_v10, %v2519_v46  ;;  %v623_v46 = vmul.f32 %v2639_v23, %v2706_v48  ;;  %v625_v48 = vmul.f32 %v2639_v23, %v2694_v32 }
 0x2c9   :  { %v956_v18 = vpop.f32.mrf.mxu1 }
 0x2ca   :  { %v957_v52 = vadd.f32 %v956_v18, %v2524_v47  ;;  %v624_v47 = vmul.f32 %v2639_v23, %v2699_v38  ;;  %v626_v38 = vmul.f32 %v2639_v23, %v2689_v30 }
 0x2cc   :  { %v986_v60 = vpack.c.bf16 %v957_v52, %v955_v51 }
 0x2d1   :  { %1861 = vmatmul.msk.bf16.gmra.mxu2 %vm3056_vm2, %v3638_v56  ;;  %v959_v53 = vpop.f32.mrf.mxu1 }
 0x2d2   :  { %v960_v33 = vadd.f32 %v959_v53, %v2507_v43 }
 0x2d9   :  { %v961_v9 = vpop.f32.mrf.mxu1 }
 0x2da   :  { %v962_v57 = vadd.f32 %v961_v9, %v2512_v44 }
 0x2dc   :  { %v987_v0 = vpack.c.bf16 %v962_v57, %v960_v33  ;;  %v2217_v33 = vld [vmem:[%s3558_s8 + $0x70] sm:$0xff] }
 0x2e1   :  { %1068 = vmatmul.bf16.vlgmr.msra.gmra.mxu2 %v984_v42  ;;  %v964_v6 = vpop.f32.mrf.mxu1 }
 0x2e2   :  { %v965_v43 = vadd.f32 %v964_v6, %v2484_v36 }
 0x2e4   :  { %v576_v62 = vpop.f32.mrf.mxu2 }
 0x2e5   :  { %v635_v45 = vadd.f32 %v619_v63, %v576_v62 }
 0x2e9   :  { %v966_v11 = vpop.f32.mrf.mxu1 }
 0x2ea   :  { %v967_v44 = vadd.f32 %v966_v11, %v2494_v39  ;;  %v2291_v11 = vld [vmem:[%s3553_s3 + $0x70] sm:$0xff] }
 0x2ec   :  { %v578_v26 = vpop.f32.mrf.mxu2 }
 0x2ed   :  { %v636_v16 = vadd.f32 %v620_v1, %v578_v26  ;;  %v988_v1 = vpack.c.bf16 %v967_v44, %v965_v43  ;;  %v2215_v43 = vld [vmem:[%s3558_s8 + $0x60] sm:$0xff] }
 0x2ef   :  { %v651_v17 = vpack.c.bf16 %v636_v16, %v635_v45 }
 0x2f1   :  { %735 = vmatmul.bf16.vlgmr.msrb.gmra.mxu3 %v651_v17  ;;  %1073 = vmatmul.bf16.gmra.mxu2 %v985_v55  ;;  %v969_v18 = vpop.f32.mrf.mxu1 }
 0x2f2   :  { %v970_v36 = vadd.f32 %v969_v18, %v2474_v34  ;;  %v2233_v34 = vld [vmem:[%s3560_s10 + $0x70] sm:$0xff] }
 0x2f4   :  { %v581_v31 = vpop.f32.mrf.mxu2 }
 0x2f5   :  { %v637_v4 = vadd.f32 %v621_v5, %v581_v31  ;;  %v2234_v31 = vld [vmem:[%s3560_s10 + $0x78] sm:$0xff]  ;;  %v2290_v5 = vld [vmem:[%s3553_s3 + $0x68] sm:$0xff] }
 0x2f6   :  { %1203 = vmatpush.bf16.msra.mxu3 %v2234_v31  ;;  %v3169_v31 = vld [vmem:[%s3559_s9] ss:$0 sm:$0xff] }
 0x2f9   :  { %v971_v45 = vpop.f32.mrf.mxu1 }
 0x2fa   :  { %v972_v17 = vadd.f32 %v971_v45, %v2479_v35  ;;  %1204 = vmatpush.bf16.msra.mxu3 %v2233_v34  ;;  %v2232_v35 = vld [vmem:[%s3560_s10 + $0x68] sm:$0xff]  ;;  %v2211_v45 = vld [vmem:[%s3558_s8 + $0x40] sm:$0xff] }
 0x2fc   :  { %v583_v19 = vpop.f32.mrf.mxu2  ;;  %v989_v23 = vpack.c.bf16 %v972_v17, %v970_v36  ;;  %v3162_v36 = vld [vmem:[%s3561_s11] ss:$0 sm:$0xff] }
 0x2fd   :  { %v638_v22 = vadd.f32 %v622_v61, %v583_v19 }
 0x2fe   :  { %1205 = vmatpush.bf16.msra.mxu3 %v2232_v35 }
 0x2ff   :  { %v652_v8 = vpack.c.bf16 %v638_v22, %v637_v4  ;;  %v2231_v22 = vld [vmem:[%s3560_s10 + $0x60] sm:$0xff] }
 0x301   :  { %740 = vmatmul.bf16.gmra.mxu3 %v652_v8  ;;  %1078 = vmatmul.bf16.gmra.mxu2 %v986_v60  ;;  %v974_v53 = vpop.f32.mrf.mxu1 }
 0x302   :  { %1206 = vmatpush.bf16.msra.mxu3 %v2231_v22 }
 0x304   :  { %v586_v20 = vpop.f32.mrf.mxu2 }
 0x305   :  { %v639_v10 = vadd.f32 %v623_v46, %v586_v20  ;;  %v2218_v20 = vld [vmem:[%s3558_s8 + $0x78] sm:$0xff]  ;;  %v2229_v46 = vld [vmem:[%s3560_s10 + $0x50] sm:$0xff] }
 0x306   :  { %870 = vmatpush.bf16.msrb.mxu0 %v2218_v20 }
 0x309   :  { %v976_v51 = vpop.f32.mrf.mxu1 }
 0x30a   :  { %v977_v52 = vadd.f32 %v2290_v5, %v976_v51  ;;  %871 = vmatpush.bf16.msrb.mxu0 %v2217_v33 }
 0x30c   :  { %v588_v54 = vpop.f32.mrf.mxu2 }
 0x30d   :  { %v640_v25 = vadd.f32 %v624_v47, %v588_v54  ;;  %v2216_v47 = vld [vmem:[%s3558_s8 + $0x68] sm:$0xff] }
 0x30e   :  { %v2228_v54 = vld [vmem:[%s3560_s10 + $0x48] sm:$0xff]  ;;  %872 = vmatpush.bf16.msrb.mxu0 %v2216_v47 }
 0x30f   :  { %v653_v42 = vpack.c.bf16 %v640_v25, %v639_v10  ;;  %v2292_v25 = vld [vmem:[%s3553_s3 + $0x78] sm:$0xff] }
 0x311   :  { %745 = vmatmul.bf16.gmra.mxu3 %v653_v42  ;;  %1083 = vmatmul.bf16.gmra.mxu2 %v987_v0  ;;  %v979_v60 = vpop.f32.mrf.mxu1 }
 0x312   :  { %v980_v10 = vadd.f32 %v2291_v11, %v979_v60  ;;  %873 = vmatpush.bf16.msrb.mxu0 %v2215_v43 }
 0x314   :  { %v591_v62 = vpop.f32.mrf.mxu2 }
 0x315   :  { %v641_v63 = vadd.f32 %v625_v48, %v591_v62  ;;  %v2227_v48 = vld [vmem:[%s3560_s10 + $0x40] sm:$0xff] }
 0x319   :  { %v981_v57 = vpop.f32.mrf.mxu1 }
 0x31a   :  { %v982_v0 = vadd.f32 %v2292_v25, %v981_v57 }
 0x31c   :  { %v593_v50 = vpop.f32.mrf.mxu2  ;;  %v991_v44 = vpack.c.bf16 %v982_v0, %v980_v10 }
 0x31d   :  { %v642_v24 = vadd.f32 %v626_v38, %v593_v50 }
 0x31f   :  { %v654_v26 = vpack.c.bf16 %v642_v24, %v641_v63  ;;  %v2212_v63 = vld [vmem:[%s3558_s8 + $0x48] sm:$0xff] }
 0x321   :  { %750 = vmatmul.bf16.gmra.mxu3 %v654_v26  ;;  %1088 = vmatmul.bf16.gmra.mxu2 %v988_v1 }
 0x324   :  { %v596_v16 = vpop.f32.mrf.mxu2 }
 0x325   :  { %v643_v39 = vadd.f32 %v2642_v27, %v596_v16  ;;  %v2289_v27 = vld [vmem:[%s3553_s3 + $0x60] sm:$0xff] }
 0x32c   :  { %v598_v32 = vpop.f32.mrf.mxu2 }
 0x32d   :  { %v644_v55 = vadd.f32 %v2654_v40, %v598_v32  ;;  %v975_v40 = vadd.f32 %v2289_v27, %v974_v53 }
 0x32f   :  { %v655_v30 = vpack.c.bf16 %v644_v55, %v643_v39  ;;  %v990_v8 = vpack.c.bf16 %v977_v52, %v975_v40 }
 0x331   :  { %755 = vmatmul.bf16.gmra.mxu3 %v655_v30  ;;  %1093 = vmatmul.bf16.gmra.mxu2 %v989_v23 }
 0x334   :  { %v601_v9 = vpop.f32.mrf.mxu2 }
 0x335   :  { %v645_v19 = vadd.f32 %v2666_v58, %v601_v9  ;;  %v2230_v58 = vld [vmem:[%s3560_s10 + $0x58] sm:$0xff] }
 0x336   :  { %1207 = vmatpush.bf16.msra.mxu3 %v2230_v58 }
 0x33a   :  { %1208 = vmatpush.bf16.msra.mxu3 %v2229_v46 }
 0x33c   :  { %v603_v61 = vpop.f32.mrf.mxu2 }
 0x33d   :  { %v646_v4 = vadd.f32 %v2678_v14, %v603_v61 }
 0x33e   :  { %1209 = vmatpush.bf16.msra.mxu3 %v2228_v54 }
 0x33f   :  { %v656_v6 = vpack.c.bf16 %v646_v4, %v645_v19 }
 0x341   :  { %760 = vmatmul.bf16.gmra.mxu3 %v656_v6  ;;  %1098 = vmatmul.bf16.gmra.mxu2 %v990_v8 }
 0x342   :  { %1210 = vmatpush.bf16.msra.mxu3 %v2227_v48 }
 0x344   :  { %v606_v14 = vpop.f32.mrf.mxu2 }
 0x345   :  { %v647_v62 = vadd.f32 %v2645_v28, %v606_v14  ;;  %v2214_v28 = vld [vmem:[%s3558_s8 + $0x58] sm:$0xff] }
 0x346   :  { %874 = vmatpush.bf16.msrb.mxu0 %v2214_v28  ;;  %1601 = vmatpush.bf16.msrb.mxu3 %v2242_v21 }
 0x34a   :  { %1602 = vmatpush.bf16.msrb.mxu3 %v2241_v29 }
 0x34c   :  { %v608_v42 = vpop.f32.mrf.mxu2 }
 0x34d   :  { %v648_v18 = vadd.f32 %v2657_v41, %v608_v42  ;;  %v2213_v41 = vld [vmem:[%s3558_s8 + $0x50] sm:$0xff] }
 0x34e   :  { %875 = vmatpush.bf16.msrb.mxu0 %v2213_v41  ;;  %1603 = vmatpush.bf16.msrb.mxu3 %v2240_v3  ;;  %v2246_v3 = vld [vmem:[%s3558_s8 + $0xd8] sm:$0xff] }
 0x34f   :  { %v657_v38 = vpack.c.bf16 %v648_v18, %v647_v62 }
 0x351   :  { %765 = vmatmul.bf16.gmra.mxu3 %v657_v38  ;;  %1103 = vmatmul.bf16.gmra.mxu2 %v991_v44 }
 0x352   :  { %876 = vmatpush.bf16.msrb.mxu0 %v2212_v63  ;;  %1604 = vmatpush.bf16.msrb.mxu3 %v2239_v13 }
 0x354   :  { %v611_v50 = vpop.f32.mrf.mxu2 }
 0x355   :  { %v649_v1 = vadd.f32 %v2669_v59, %v611_v50 }
 0x356   :  { %877 = vmatpush.bf16.msrb.mxu0 %v2211_v45  ;;  %1605 = vmatpush.bf16.msrb.mxu3 %v2238_v37 }
 0x35a   :  { %1606 = vmatpush.bf16.msrb.mxu3 %v2237_v2 }
 0x35c   :  { %v613_v24 = vpop.f32.mrf.mxu2 }
 0x35d   :  { %v650_v26 = vadd.f32 %v2681_v15, %v613_v24 }
 0x35f   :  { %v658_v16 = vpack.c.bf16 %v650_v26, %v649_v1 }
 0x361   :  { %770 = vmatmul.bf16.gmra.mxu3 %v658_v16 }
 0x364   :  { %v1069_v53 = vpop.f32.mrf.mxu2 }
 0x365   :  { %v1070_v17 = vadd.f32 %v3162_v36, %v1069_v53 }
 0x367   :  { %v1109_v39 = vmax.f32 %v1070_v17, 0.0 }
 0x36c   :  { %v1071_v32 = vpop.f32.mrf.mxu2 }
 0x36d   :  { %v1072_v59 = vadd.f32 %v3162_v36, %v1071_v32 }
 0x36f   :  { %v1110_v15 = vmax.f32 %v1072_v59, 0.0 }
 0x371   :  { %v1125_v55 = vpack.c.bf16 %v1110_v15, %v1109_v39 }
 0x373   :  { %1211 = vmatmul.bf16.vlgmr.msra.gmra.mxu3 %v1125_v55 }
 0x374   :  { %v736_v23 = vpop.f32.mrf.mxu3  ;;  %v1074_v30 = vpop.f32.mrf.mxu2 }
 0x375   :  { %v737_v9 = vadd.f32 %v3169_v31, %v736_v23  ;;  %v1075_v51 = vadd.f32 %v3162_v36, %v1074_v30 }
 0x377   :  { %v776_v5 = vmax.f32 %v737_v9, 0.0  ;;  %v1111_v52 = vmax.f32 %v1075_v51, 0.0 }
 0x37c   :  { %v738_v34 = vpop.f32.mrf.mxu3  ;;  %v1076_v35 = vpop.f32.mrf.mxu2 }
 0x37d   :  { %v739_v27 = vadd.f32 %v3169_v31, %v738_v34  ;;  %v1077_v40 = vadd.f32 %v3162_v36, %v1076_v35 }
 0x37f   :  { %v777_v61 = vmax.f32 %v739_v27, 0.0  ;;  %v1112_v19 = vmax.f32 %v1077_v40, 0.0 }
 0x381   :  { %v792_v4 = vpack.c.bf16 %v777_v61, %v776_v5  ;;  %v1126_v22 = vpack.c.bf16 %v1112_v19, %v1111_v52 }
 0x383   :  { %878 = vmatmul.bf16.vlgmr.msrb.gmra.mxu0 %v792_v4  ;;  %1216 = vmatmul.bf16.gmra.mxu3 %v1126_v22 }
 0x384   :  { %v741_v60 = vpop.f32.mrf.mxu3  ;;  %v1079_v8 = vpop.f32.mrf.mxu2 }
 0x385   :  { %v742_v6 = vadd.f32 %v3169_v31, %v741_v60  ;;  %v1080_v20 = vadd.f32 %v3162_v36, %v1079_v8 }
 0x387   :  { %v778_v57 = vmax.f32 %v742_v6, 0.0  ;;  %v1113_v47 = vmax.f32 %v1080_v20, 0.0 }
 0x38c   :  { %v743_v58 = vpop.f32.mrf.mxu3  ;;  %v1081_v14 = vpop.f32.mrf.mxu2 }
 0x38d   :  { %v744_v33 = vadd.f32 %v3169_v31, %v743_v58  ;;  %v1082_v46 = vadd.f32 %v3162_v36, %v1081_v14 }
 0x38f   :  { %v779_v54 = vmax.f32 %v744_v33, 0.0  ;;  %v1114_v11 = vmax.f32 %v1082_v46, 0.0 }
 0x391   :  { %v793_v10 = vpack.c.bf16 %v779_v54, %v778_v57  ;;  %v1127_v25 = vpack.c.bf16 %v1114_v11, %v1113_v47 }
 0x393   :  { %883 = vmatmul.bf16.gmra.mxu0 %v793_v10  ;;  %1221 = vmatmul.bf16.gmra.mxu3 %v1127_v25 }
 0x394   :  { %v746_v0 = vpop.f32.mrf.mxu3  ;;  %v1084_v42 = vpop.f32.mrf.mxu2 }
 0x395   :  { %v747_v62 = vadd.f32 %v3169_v31, %v746_v0  ;;  %v1085_v18 = vadd.f32 %v3162_v36, %v1084_v42 }
 0x397   :  { %v780_v28 = vmax.f32 %v747_v62, 0.0  ;;  %v1115_v50 = vmax.f32 %v1085_v18, 0.0 }
 0x39c   :  { %v748_v43 = vpop.f32.mrf.mxu3  ;;  %v1086_v48 = vpop.f32.mrf.mxu2 }
 0x39d   :  { %v749_v44 = vadd.f32 %v3169_v31, %v748_v43  ;;  %v1087_v38 = vadd.f32 %v3162_v36, %v1086_v48 }
 0x39f   :  { %v781_v41 = vmax.f32 %v749_v44, 0.0  ;;  %v1116_v63 = vmax.f32 %v1087_v38, 0.0 }
 0x3a1   :  { %v794_v24 = vpack.c.bf16 %v781_v41, %v780_v28  ;;  %v1128_v1 = vpack.c.bf16 %v1116_v63, %v1115_v50 }
 0x3a3   :  { %888 = vmatmul.bf16.gmra.mxu0 %v794_v24  ;;  %1226 = vmatmul.bf16.gmra.mxu3 %v1128_v1 }
 0x3a4   :  { %v751_v26 = vpop.f32.mrf.mxu3  ;;  %v1089_v45 = vpop.f32.mrf.mxu2 }
 0x3a5   :  { %v752_v16 = vadd.f32 %v3169_v31, %v751_v26  ;;  %v1090_v53 = vadd.f32 %v3162_v36, %v1089_v45 }
 0x3a7   :  { %v782_v15 = vmax.f32 %v752_v16, 0.0  ;;  %v1117_v55 = vmax.f32 %v1090_v53, 0.0 }
 0x3ac   :  { %v753_v17 = vpop.f32.mrf.mxu3  ;;  %v1091_v32 = vpop.f32.mrf.mxu2 }
 0x3ad   :  { %v754_v59 = vadd.f32 %v3169_v31, %v753_v17  ;;  %v1092_v39 = vadd.f32 %v3162_v36, %v1091_v32 }
 0x3af   :  { %v783_v23 = vmax.f32 %v754_v59, 0.0  ;;  %v1118_v30 = vmax.f32 %v1092_v39, 0.0 }
 0x3b1   :  { %v1129_v9 = vpack.c.bf16 %v1118_v30, %v1117_v55  ;;  %v795_v51 = vpack.c.bf16 %v783_v23, %v782_v15 }
 0x3b3   :  { %893 = vmatmul.bf16.gmra.mxu0 %v795_v51  ;;  %1231 = vmatmul.bf16.gmra.mxu3 %v1129_v9 }
 0x3b4   :  { %v756_v34 = vpop.f32.mrf.mxu3  ;;  %v1094_v35 = vpop.f32.mrf.mxu2 }
 0x3b5   :  { %v757_v27 = vadd.f32 %v3169_v31, %v756_v34  ;;  %v1095_v40 = vadd.f32 %v3162_v36, %v1094_v35 }
 0x3b7   :  { %v784_v4 = vmax.f32 %v757_v27, 0.0  ;;  %v1119_v22 = vmax.f32 %v1095_v40, 0.0 }
 0x3bc   :  { %v758_v5 = vpop.f32.mrf.mxu3  ;;  %v1096_v52 = vpop.f32.mrf.mxu2 }
 0x3bd   :  { %v759_v61 = vadd.f32 %v3169_v31, %v758_v5  ;;  %v1097_v19 = vadd.f32 %v3162_v36, %v1096_v52 }
 0x3bf   :  { %v785_v60 = vmax.f32 %v759_v61, 0.0  ;;  %v1120_v8 = vmax.f32 %v1097_v19, 0.0 }
 0x3c1   :  { %v1130_v6 = vpack.c.bf16 %v1120_v8, %v1119_v22  ;;  %v796_v20 = vpack.c.bf16 %v785_v60, %v784_v4 }
 0x3c3   :  { %898 = vmatmul.bf16.gmra.mxu0 %v796_v20  ;;  %1236 = vmatmul.bf16.gmra.mxu3 %v1130_v6 }
 0x3c4   :  { %v761_v58 = vpop.f32.mrf.mxu3  ;;  %v1099_v14 = vpop.f32.mrf.mxu2 }
 0x3c5   :  { %v762_v33 = vadd.f32 %v3169_v31, %v761_v58  ;;  %v1100_v46 = vadd.f32 %v3162_v36, %v1099_v14 }
 0x3c7   :  { %v786_v10 = vmax.f32 %v762_v33, 0.0  ;;  %v1121_v25 = vmax.f32 %v1100_v46, 0.0 }
 0x3cc   :  { %v763_v57 = vpop.f32.mrf.mxu3  ;;  %v1101_v47 = vpop.f32.mrf.mxu2 }
 0x3cd   :  { %v764_v54 = vadd.f32 %v3169_v31, %v763_v57  ;;  %v1102_v11 = vadd.f32 %v3162_v36, %v1101_v47 }
 0x3cf   :  { %v787_v0 = vmax.f32 %v764_v54, 0.0  ;;  %v1122_v42 = vmax.f32 %v1102_v11, 0.0 }
 0x3d1   :  { %v1131_v62 = vpack.c.bf16 %v1122_v42, %v1121_v25  ;;  %v797_v18 = vpack.c.bf16 %v787_v0, %v786_v10 }
 0x3d3   :  { %903 = vmatmul.bf16.gmra.mxu0 %v797_v18  ;;  %1241 = vmatmul.bf16.gmra.mxu3 %v1131_v62 }
 0x3d4   :  { %v766_v43 = vpop.f32.mrf.mxu3  ;;  %v1104_v48 = vpop.f32.mrf.mxu2 }
 0x3d5   :  { %v767_v44 = vadd.f32 %v3169_v31, %v766_v43  ;;  %v1105_v38 = vadd.f32 %v3162_v36, %v1104_v48 }
 0x3d7   :  { %v788_v24 = vmax.f32 %v767_v44, 0.0  ;;  %v1123_v1 = vmax.f32 %v1105_v38, 0.0 }
 0x3dc   :  { %v768_v28 = vpop.f32.mrf.mxu3  ;;  %v1106_v50 = vpop.f32.mrf.mxu2 }
 0x3dd   :  { %v769_v41 = vadd.f32 %v3169_v31, %v768_v28  ;;  %v1107_v63 = vadd.f32 %v3162_v36, %v1106_v50 }
 0x3df   :  { %v789_v26 = vmax.f32 %v769_v41, 0.0  ;;  %v1124_v45 = vmax.f32 %v1107_v63, 0.0 }
 0x3e1   :  { %v1132_v16 = vpack.c.bf16 %v1124_v45, %v1123_v1  ;;  %v798_v53 = vpack.c.bf16 %v789_v26, %v788_v24 }
 0x3e3   :  { %908 = vmatmul.bf16.gmra.mxu0 %v798_v53  ;;  %1246 = vmatmul.bf16.gmra.mxu3 %v1132_v16 }
 0x3e4   :  { %v771_v17 = vpop.f32.mrf.mxu3 }
 0x3e5   :  { %v772_v32 = vadd.f32 %v3169_v31, %v771_v17 }
 0x3e7   :  { %v790_v15 = vmax.f32 %v772_v32, 0.0 }
 0x3ec   :  { %v773_v59 = vpop.f32.mrf.mxu3 }
 0x3ed   :  { %v774_v39 = vadd.f32 %v3169_v31, %v773_v59  ;;  %v2285_v31 = vld [vmem:[%s3561_s11 + $0x1] ss:$0 sm:$0xff] }
 0x3ef   :  { %v791_v55 = vmax.f32 %v774_v39, 0.0 }
 0x3f1   :  { %v799_v23 = vpack.c.bf16 %v791_v55, %v790_v15 }
 0x3f3   :  { %913 = vmatmul.bf16.gmra.mxu0 %v799_v23 }
 0x3f6   :  { %v1212_v30 = vpop.f32.mrf.mxu3 }
 0x3fe   :  { %v1214_v36 = vpop.f32.mrf.mxu3 }
 0x3ff   :  { %v1215_v39 = vadd.f32 %v2285_v31, %v1214_v36 }
 0x400   :  { %v3204_v57 = vpop.f32.mrf.mxu0 }
 0x406   :  { %v1217_v9 = vpop.f32.mrf.mxu3 }
 0x407   :  { %v1218_v32 = vadd.f32 %v2285_v31, %v1217_v9 }
 0x408   :  { %v3206_v28 = vpop.f32.mrf.mxu0 }
 0x40e   :  { %v1219_v51 = vpop.f32.mrf.mxu3 }
 0x40f   :  { %v1220_v16 = vadd.f32 %v2285_v31, %v1219_v51 }
 0x410   :  { %v884_v55 = vpop.f32.mrf.mxu0 }
 0x411   :  { %v1255_v15 = vmax.f32 %v1220_v16, 0.0 }
 0x416   :  { %v1222_v34 = vpop.f32.mrf.mxu3 }
 0x417   :  { %v1223_v26 = vadd.f32 %v2285_v31, %v1222_v34 }
 0x419   :  { %v1256_v59 = vmax.f32 %v1223_v26, 0.0 }
 0x41e   :  { %v1224_v35 = vpop.f32.mrf.mxu3 }
 0x41f   :  { %v1225_v63 = vadd.f32 %v2285_v31, %v1224_v35 }
 0x421   :  { %v1257_v53 = vmax.f32 %v1225_v63, 0.0 }
 0x423   :  { %v1270_v23 = vpack.c.bf16 %v1257_v53, %v1256_v59 }
 0x426   :  { %v1227_v27 = vpop.f32.mrf.mxu3 }
 0x427   :  { %v1228_v50 = vadd.f32 %v2285_v31, %v1227_v27  ;;  %v1254_v27 = vmax.f32 %v1218_v32, 0.0 }
 0x429   :  { %v1258_v45 = vmax.f32 %v1228_v50, 0.0  ;;  %v1269_v35 = vpack.c.bf16 %v1255_v15, %v1254_v27 }
 0x42e   :  { %v1229_v40 = vpop.f32.mrf.mxu3 }
 0x42f   :  { %v1230_v48 = vadd.f32 %v2285_v31, %v1229_v40  ;;  %v1213_v40 = vadd.f32 %v2285_v31, %v1212_v30 }
 0x431   :  { %v1259_v24 = vmax.f32 %v1230_v48, 0.0 }
 0x433   :  { %v1271_v17 = vpack.c.bf16 %v1259_v24, %v1258_v45 }
 0x436   :  { %v1232_v5 = vpop.f32.mrf.mxu3 }
 0x437   :  { %v1233_v18 = vadd.f32 %v2285_v31, %v1232_v5  ;;  %v1253_v5 = vmax.f32 %v1215_v39, 0.0 }
 0x439   :  { %v1260_v41 = vmax.f32 %v1233_v18, 0.0 }
 0x43e   :  { %v1234_v52 = vpop.f32.mrf.mxu3 }
 0x43f   :  { %v1235_v0 = vadd.f32 %v2285_v31, %v1234_v52  ;;  %v1252_v52 = vmax.f32 %v1213_v40, 0.0 }
 0x441   :  { %v1261_v44 = vmax.f32 %v1235_v0, 0.0  ;;  %v1268_v34 = vpack.c.bf16 %v1253_v5, %v1252_v52 }
 0x443   :  { %v1272_v1 = vpack.c.bf16 %v1261_v44, %v1260_v41 }
 0x446   :  { %v1237_v61 = vpop.f32.mrf.mxu3 }
 0x447   :  { %v1238_v10 = vadd.f32 %v2285_v31, %v1237_v61  ;;  %v3208_v61 = vpop.f32.mrf.mxu0 }
 0x449   :  { %v1262_v43 = vmax.f32 %v1238_v10, 0.0 }
 0x44e   :  { %v1239_v19 = vpop.f32.mrf.mxu3 }
 0x44f   :  { %v1240_v47 = vadd.f32 %v2285_v31, %v1239_v19  ;;  %v889_v9 = vpop.f32.mrf.mxu0 }
 0x451   :  { %v1263_v42 = vmax.f32 %v1240_v47, 0.0 }
 0x453   :  { %v1273_v38 = vpack.c.bf16 %v1263_v42, %v1262_v43 }
 0x456   :  { %v1242_v4 = vpop.f32.mrf.mxu3 }
 0x457   :  { %v1243_v14 = vadd.f32 %v2285_v31, %v1242_v4  ;;  %v3216_v30 = vpop.f32.mrf.mxu0 }
 0x459   :  { %v1264_v25 = vmax.f32 %v1243_v14, 0.0 }
 0x45e   :  { %v1244_v22 = vpop.f32.mrf.mxu3 }
 0x45f   :  { %v1245_v20 = vadd.f32 %v2285_v31, %v1244_v22  ;;  %v894_v51 = vpop.f32.mrf.mxu0 }
 0x461   :  { %v1265_v54 = vmax.f32 %v1245_v20, 0.0 }
 0x463   :  { %v1274_v62 = vpack.c.bf16 %v1265_v54, %v1264_v25  ;;  %v3241_v54 = vld [vmem:[%s3559_s9 + $0x1] ss:$0 sm:$0xff] }
 0x464   :  { %v880_v10 = vadd.f32 %v3241_v54, %v3204_v57  ;;  %v885_v18 = vadd.f32 %v3241_v54, %v884_v55  ;;  %v890_v50 = vadd.f32 %v3241_v54, %v889_v9 }
 0x466   :  { %v1247_v60 = vpop.f32.mrf.mxu3  ;;  %v919_v25 = vmax.f32 %v880_v10, 0.0  ;;  %v921_v43 = vmax.f32 %v885_v18, 0.0  ;;  %v923_v41 = vmax.f32 %v890_v50, 0.0  ;;  %v892_v50 = vadd.f32 %v3241_v54, %v3216_v30 }
 0x467   :  { %v1248_v8 = vadd.f32 %v2285_v31, %v1247_v60  ;;  %v3221_v4 = vpop.f32.mrf.mxu0  ;;  %v882_v30 = vadd.f32 %v3241_v54, %v3206_v28  ;;  %v3662_v28 = vld [vmem:[#allocation12_spill] sm:$0xff] }
 0x469   :  { %v1266_v33 = vmax.f32 %v1248_v8, 0.0 }
 0x46e   :  { %v1249_v6 = vpop.f32.mrf.mxu3 }
 0x46f   :  { %v1250_v58 = vadd.f32 %v2285_v31, %v1249_v6  ;;  %v899_v22 = vpop.f32.mrf.mxu0 }
 0x471   :  { %v1267_v46 = vmax.f32 %v1250_v58, 0.0 }
 0x473   :  { %v1275_v11 = vpack.c.bf16 %v1267_v46, %v1266_v33 }
 0x475   :  { %1276 = vmatpush.bf16.msra.mxu0 %v1275_v11 }
 0x477   :  { %v901_v12 = vpop.f32.mrf.mxu0 }
 0x479   :  { %1277 = vmatpush.bf16.msra.mxu0 %v1274_v62 }
 0x47d   :  { %1278 = vmatpush.bf16.msra.mxu0 %v1273_v38 }
 0x47f   :  { %v904_v8 = vpop.f32.mrf.mxu0 }
 0x480   :  { %v905_v14 = vadd.f32 %v3241_v54, %v904_v8  ;;  %v897_v8 = vadd.f32 %v3241_v54, %v3221_v4  ;;  %v887_v4 = vadd.f32 %v3241_v54, %v3208_v61 }
 0x481   :  { %1279 = vmatpush.bf16.msra.mxu0 %v1272_v1  ;;  %v895_v1 = vadd.f32 %v3241_v54, %v894_v51 }
 0x483   :  { %v925_v26 = vmax.f32 %v895_v1, 0.0 }
 0x485   :  { %1280 = vmatpush.bf16.msra.mxu0 %v1271_v17  ;;  %v900_v17 = vadd.f32 %v3241_v54, %v899_v22 }
 0x487   :  { %v906_v6 = vpop.f32.mrf.mxu0  ;;  %v927_v32 = vmax.f32 %v900_v17, 0.0 }
 0x488   :  { %v907_v22 = vadd.f32 %v3241_v54, %v906_v6  ;;  %v929_v6 = vmax.f32 %v905_v14, 0.0 }
 0x489   :  { %1281 = vmatpush.bf16.msra.mxu0 %v1270_v23 }
 0x48d   :  { %1282 = vmatpush.bf16.msra.mxu0 %v1269_v35 }
 0x48f   :  { %v909_v58 = vpop.f32.mrf.mxu0 }
 0x490   :  { %v910_v9 = vadd.f32 %v3241_v54, %v909_v58  ;;  %v902_v58 = vadd.f32 %v3241_v54, %v901_v12 }
 0x491   :  { %1283 = vmatpush.bf16.msra.mxu0 %v1268_v34 }
 0x492   :  { %v931_v47 = vmax.f32 %v910_v9, 0.0  ;;  %v928_v18 = vmax.f32 %v902_v58, 0.0 }
 0x494   :  { %2041 = vmatmul.msk.bf16.vlgmr.msra.gmra.mxu0 %vm2598_vm0, %v3638_v56 }
 0x497   :  { %v911_v33 = vpop.f32.mrf.mxu0 }
 0x498   :  { %v912_v34 = vadd.f32 %v3241_v54, %v911_v33 }
 0x49a   :  { %v932_v60 = vmax.f32 %v912_v34, 0.0  ;;  %v2057_v34 = vld [vmem:[%s3552_s2 + $0x88] sm:$0xff] }
 0x49f   :  { %v914_v46 = vpop.f32.mrf.mxu0 }
 0x4a0   :  { %v915_v35 = vadd.f32 %v3241_v54, %v914_v46 }
 0x4a2   :  { %v933_v36 = vmax.f32 %v915_v35, 0.0 }
 0x4a4   :  { %2043 = vmatmul.msk.bf16.gmra.mxu0 %vm2626_vm10, %v3638_v56 }
 0x4a7   :  { %v916_v11 = vpop.f32.mrf.mxu0 }
 0x4a8   :  { %v917_v52 = vadd.f32 %v3241_v54, %v916_v11  ;;  %v930_v11 = vmax.f32 %v907_v22, 0.0  ;;  %v3664_v54 = vld [vmem:[#allocation13_spill] sm:$0xff] }
 0x4aa   :  { %v934_v51 = vmax.f32 %v917_v52, 0.0  ;;  %v2056_v52 = vld [vmem:[%s3552_s2 + $0x80] sm:$0xff] }
 0x4b4   :  { %2045 = vmatmul.msk.bf16.gmra.mxu0 %vm2581_vm8, %v3638_v56 }
 0x4c4   :  { %2047 = vmatmul.msk.bf16.gmra.mxu0 %vm2617_vm6, %v3638_v56 }
 0x4d4   :  { %2049 = vmatmul.msk.bf16.gmra.mxu0 %vm2565_vm4, %v3638_v56  ;;  %vm3663_vm4 = vnez %v3662_v28 }
 0x4e4   :  { %2051 = vmatmul.msk.bf16.gmra.mxu0 %vm2602_vm1, %v3638_v56 }
 0x4f4   :  { %2053 = vmatmul.msk.bf16.gmra.mxu0 %vm2569_vm5, %v3638_v56  ;;  %vm3665_vm5 = vnez %v3664_v54 }
 0x504   :  { %2055 = vmatmul.msk.bf16.gmra.mxu0 %vm2590_vm11, %v3638_v56 }
 0x511   :  { %v1285_v0 = vpop.f32.mrf.mxu0 }
 0x512   :  { %v3245_v42 = vadd.f32 %v1285_v0, %v919_v25 }
 0x519   :  { %v3247_v62 = vpop.f32.mrf.mxu0 }
 0x521   :  { %v1290_v48 = vpop.f32.mrf.mxu0 }
 0x522   :  { %v3250_v44 = vadd.f32 %v1290_v48, %v921_v43 }
 0x529   :  { %v1292_v38 = vpop.f32.mrf.mxu0 }
 0x531   :  { %v1295_v63 = vpop.f32.mrf.mxu0 }
 0x532   :  { %v3253_v24 = vadd.f32 %v1295_v63, %v923_v41  ;;  %v926_v41 = vmax.f32 %v897_v8, 0.0 }
 0x539   :  { %v1297_v57 = vpop.f32.mrf.mxu0 }
 0x541   :  { %v1300_v45 = vpop.f32.mrf.mxu0 }
 0x542   :  { %v3256_v16 = vadd.f32 %v1300_v45, %v925_v26  ;;  %v924_v26 = vmax.f32 %v892_v50, 0.0  ;;  %v2060_v50 = vld [vmem:[%s3552_s2 + $0xa0] sm:$0xff] }
 0x544   :  { %v3298_v45 = vadd.f32 %v1297_v57, %v924_v26 }
 0x549   :  { %v1302_v53 = vpop.f32.mrf.mxu0 }
 0x54a   :  { %v3292_v63 = vadd.f32 %v1302_v53, %v926_v41  ;;  %v2061_v41 = vld [vmem:[%s3552_s2 + $0xa8] sm:$0xff] }
 0x54c   :  { %v1344_v17 = vpack.c.bf16 %v3292_v63, %v3256_v16 }
 0x551   :  { %v1305_v59 = vpop.f32.mrf.mxu0 }
 0x552   :  { %v3259_v39 = vadd.f32 %v1305_v59, %v927_v32  ;;  %v922_v32 = vmax.f32 %v887_v4, 0.0  ;;  %v1343_v59 = vpack.c.bf16 %v3298_v45, %v3253_v24 }
 0x554   :  { %v3304_v53 = vadd.f32 %v1292_v38, %v922_v32  ;;  %v3666_v38 = vld [vmem:[#allocation14_spill] sm:$0xff] }
 0x555   :  { %vm3667_vm8 = vnez %v3666_v38 }
 0x556   :  { %v1342_v57 = vpack.c.bf16 %v3304_v53, %v3250_v44 }
 0x559   :  { %v1307_v15 = vpop.f32.mrf.mxu0 }
 0x55a   :  { %v3286_v48 = vadd.f32 %v1307_v15, %v928_v18  ;;  %v920_v15 = vmax.f32 %v882_v30, 0.0 }
 0x55c   :  { %v1345_v1 = vpack.c.bf16 %v3286_v48, %v3259_v39  ;;  %v3309_v61 = vadd.f32 %v3247_v62, %v920_v15  ;;  %v3668_v62 = vld [vmem:[#allocation15_spill] sm:$0xff] }
 0x55d   :  { %vm3669_vm11 = vnez %v3668_v62  ;;  %v2062_v15 = vld [vmem:[%s3552_s2 + $0xb0] sm:$0xff] }
 0x561   :  { %v1310_v55 = vpop.f32.mrf.mxu0 }
 0x562   :  { %v3284_v43 = vadd.f32 %v1310_v55, %v929_v6  ;;  %v1341_v55 = vpack.c.bf16 %v3309_v61, %v3245_v42 }
 0x569   :  { %v1312_v23 = vpop.f32.mrf.mxu0 }
 0x56a   :  { %v3278_v25 = vadd.f32 %v1312_v23, %v930_v11  ;;  %v3670_v23 = vld [vmem:[#allocation16_spill] sm:$0xff] }
 0x56b   :  { %vm3671_vm0 = vnez %v3670_v23 }
 0x56c   :  { %v1346_v12 = vpack.c.bf16 %v3278_v25, %v3284_v43 }
 0x571   :  { %v1315_v40 = vpop.f32.mrf.mxu0 }
 0x572   :  { %v3276_v10 = vadd.f32 %v1315_v40, %v931_v47  ;;  %v3672_v40 = vld [vmem:[#allocation17_spill] sm:$0xff]  ;;  %v2058_v47 = vld [vmem:[%s3552_s2 + $0x90] sm:$0xff] }
 0x573   :  { %vm3673_vm1 = vnez %v3672_v40 }
 0x579   :  { %v1317_v27 = vpop.f32.mrf.mxu0 }
 0x57a   :  { %v3271_v46 = vadd.f32 %v1317_v27, %v932_v60  ;;  %v3674_v27 = vld [vmem:[#allocation18_spill] sm:$0xff] }
 0x57b   :  { %vm3675_vm6 = vnez %v3674_v27 }
 0x57c   :  { %v1347_v0 = vpack.c.bf16 %v3271_v46, %v3276_v10 }
 0x581   :  { %v1320_v5 = vpop.f32.mrf.mxu0 }
 0x582   :  { %v3266_v31 = vadd.f32 %v1320_v5, %v933_v36  ;;  %v3676_v5 = vld [vmem:[#allocation19_spill] sm:$0xff] }
 0x583   :  { %vm3677_vm10 = vnez %v3676_v5 }
 0x589   :  { %v1322_v19 = vpop.f32.mrf.mxu0 }
 0x58a   :  { %v3268_v20 = vadd.f32 %v1322_v19, %v934_v51 }
 0x58c   :  { %v1348_v33 = vpack.c.bf16 %v3268_v20, %v3266_v31 }
 0x58e   :  { %1366 = vmatpush.bf16.msrb.mxu1 %v1348_v33  ;;  %v2059_v33 = vld [vmem:[%s3552_s2 + $0x98] sm:$0xff] }
 0x592   :  { %1367 = vmatpush.bf16.msrb.mxu1 %v1347_v0 }
 0x596   :  { %1368 = vmatpush.bf16.msrb.mxu1 %v1346_v12 }
 0x59a   :  { %1369 = vmatpush.bf16.msrb.mxu1 %v1345_v1 }
 0x59e   :  { %1370 = vmatpush.bf16.msrb.mxu1 %v1344_v17 }
 0x5a2   :  { %1371 = vmatpush.bf16.msrb.mxu1 %v1343_v59 }
 0x5a6   :  { %1372 = vmatpush.bf16.msrb.mxu1 %v1342_v57  ;;  %v2063_v57 = vld [vmem:[%s3552_s2 + $0xb8] sm:$0xff] }
 0x5aa   :  { %1373 = vmatpush.bf16.msrb.mxu1 %v1341_v55 }
 0x5ad   :  { %2073 = vmatmul.msk.bf16.vlgmr.msrb.gmra.mxu1 %vm3663_vm4, %v3638_v56 }
 0x5bd   :  { %2075 = vmatmul.msk.bf16.gmra.mxu1 %vm3665_vm5, %v3638_v56 }
 0x5cd   :  { %2077 = vmatmul.msk.bf16.gmra.mxu1 %vm3667_vm8, %v3638_v56 }
 0x5dd   :  { %2079 = vmatmul.msk.bf16.gmra.mxu1 %vm3669_vm11, %v3638_v56 }
 0x5ed   :  { %2081 = vmatmul.msk.bf16.gmra.mxu1 %vm3671_vm0, %v3638_v56 }
 0x5fd   :  { %2083 = vmatmul.msk.bf16.gmra.mxu1 %vm3673_vm1, %v3638_v56 }
 0x60d   :  { %2085 = vmatmul.msk.bf16.gmra.mxu1 %vm3675_vm6, %v3638_v56 }
 0x61d   :  { %2087 = vmatmul.msk.bf16.gmra.mxu1 %vm3677_vm10, %v3638_v56 }
 0x62a   :  { %v1375_v35 = vpop.f32.mrf.mxu1 }
 0x62b   :  { %v1376_v9 = vadd.f32 %v2056_v52, %v1375_v35 }
 0x62d   :  { %v1415_v19 = vmax.f32 %v1376_v9, 0.0 }
 0x632   :  { %v1377_v36 = vpop.f32.mrf.mxu1 }
 0x633   :  { %v1378_v51 = vadd.f32 %v2057_v34, %v1377_v36  ;;  %v2070_v36 = vld [vmem:[%s3552_s2 + $0xf0] sm:$0xff] }
 0x635   :  { %v1416_v22 = vmax.f32 %v1378_v51, 0.0  ;;  %v2069_v51 = vld [vmem:[%s3552_s2 + $0xe8] sm:$0xff] }
 0x637   :  { %v3345_v60 = vpack.c.bf16 %v1416_v22, %v1415_v19  ;;  %v2071_v19 = vld [vmem:[%s3552_s2 + $0xf8] sm:$0xff] }
 0x63a   :  { %v1380_v14 = vpop.f32.mrf.mxu1 }
 0x63b   :  { %v1381_v58 = vadd.f32 %v2058_v47, %v1380_v14  ;;  %v2068_v14 = vld [vmem:[%s3552_s2 + $0xe0] sm:$0xff] }
 0x63d   :  { %v1417_v0 = vmax.f32 %v1381_v58, 0.0 }
 0x642   :  { %v1382_v11 = vpop.f32.mrf.mxu1 }
 0x643   :  { %v1383_v6 = vadd.f32 %v2059_v33, %v1382_v11  ;;  %v2067_v11 = vld [vmem:[%s3552_s2 + $0xd8] sm:$0xff] }
 0x645   :  { %v1418_v8 = vmax.f32 %v1383_v6, 0.0 }
 0x647   :  { %v1432_v18 = vpack.c.bf16 %v1418_v8, %v1417_v0 }
 0x64a   :  { %v1385_v12 = vpop.f32.mrf.mxu1 }
 0x64b   :  { %v1386_v1 = vadd.f32 %v2060_v50, %v1385_v12  ;;  %v2066_v12 = vld [vmem:[%s3552_s2 + $0xd0] sm:$0xff] }
 0x64d   :  { %v1419_v17 = vmax.f32 %v1386_v1, 0.0 }
 0x652   :  { %v1387_v4 = vpop.f32.mrf.mxu1 }
 0x653   :  { %v1388_v26 = vadd.f32 %v2061_v41, %v1387_v4  ;;  %v2065_v4 = vld [vmem:[%s3552_s2 + $0xc8] sm:$0xff] }
 0x655   :  { %v1420_v30 = vmax.f32 %v1388_v26, 0.0 }
 0x657   :  { %v1433_v32 = vpack.c.bf16 %v1420_v30, %v1419_v17  ;;  %v2064_v30 = vld [vmem:[%s3552_s2 + $0xc0] sm:$0xff] }
 0x65a   :  { %v1390_v59 = vpop.f32.mrf.mxu1 }
 0x65b   :  { %v1391_v55 = vadd.f32 %v2062_v15, %v1390_v59 }
 0x65d   :  { %v1421_v38 = vmax.f32 %v1391_v55, 0.0 }
 0x662   :  { %v1392_v28 = vpop.f32.mrf.mxu1 }
 0x663   :  { %v1393_v54 = vadd.f32 %v2063_v57, %v1392_v28 }
 0x665   :  { %v1422_v62 = vmax.f32 %v1393_v54, 0.0 }
 0x667   :  { %v1434_v23 = vpack.c.bf16 %v1422_v62, %v1421_v38 }
 0x66a   :  { %v1395_v40 = vpop.f32.mrf.mxu1 }
 0x66b   :  { %v1396_v55 = vadd.f32 %v2064_v30, %v1395_v40 }
 0x66d   :  { %v1423_v62 = vmax.f32 %v1396_v55, 0.0 }
 0x672   :  { %v1397_v27 = vpop.f32.mrf.mxu1 }
 0x673   :  { %v1398_v59 = vadd.f32 %v2065_v4, %v1397_v27 }
 0x675   :  { %v1424_v54 = vmax.f32 %v1398_v59, 0.0 }
 0x67a   :  { %v1400_v5 = vpop.f32.mrf.mxu1 }
 0x67b   :  { %v1401_v26 = vadd.f32 %v2066_v12, %v1400_v5 }
 0x67d   :  { %v1425_v28 = vmax.f32 %v1401_v26, 0.0 }
 0x682   :  { %v1402_v35 = vpop.f32.mrf.mxu1 }
 0x683   :  { %v1403_v50 = vadd.f32 %v2067_v11, %v1402_v35  ;;  %v1435_v35 = vpack.c.bf16 %v1424_v54, %v1423_v62 }
 0x685   :  { %v1426_v15 = vmax.f32 %v1403_v50, 0.0 }
 0x687   :  { %v1436_v38 = vpack.c.bf16 %v1426_v15, %v1425_v28 }
 0x68a   :  { %v1405_v52 = vpop.f32.mrf.mxu1 }
 0x68b   :  { %v1406_v6 = vadd.f32 %v2068_v14, %v1405_v52 }
 0x68d   :  { %v1427_v17 = vmax.f32 %v1406_v6, 0.0 }
 0x692   :  { %v1407_v34 = vpop.f32.mrf.mxu1 }
 0x693   :  { %v1408_v33 = vadd.f32 %v2069_v51, %v1407_v34 }
 0x695   :  { %v1428_v41 = vmax.f32 %v1408_v33, 0.0 }
 0x697   :  { %v1437_v57 = vpack.c.bf16 %v1428_v41, %v1427_v17 }
 0x69a   :  { %v1410_v9 = vpop.f32.mrf.mxu1 }
 0x69b   :  { %v1411_v22 = vadd.f32 %v2070_v36, %v1410_v9 }
 0x69d   :  { %v1429_v0 = vmax.f32 %v1411_v22, 0.0 }
 0x6a2   :  { %v1412_v47 = vpop.f32.mrf.mxu1 }
 0x6a3   :  { %v1413_v58 = vadd.f32 %v2071_v19, %v1412_v47 }
 0x6a5   :  { %v1430_v8 = vmax.f32 %v1413_v58, 0.0 }
 0x6a7   :  { %v1438_v1 = vpack.c.bf16 %v1430_v8, %v1429_v0 }
 0x6a9   :  { %1439 = vmatpush.bf16.msrb.mxu2 %v1438_v1 }
 0x6ad   :  { %1440 = vmatpush.bf16.msrb.mxu2 %v1437_v57 }
 0x6b1   :  { %1441 = vmatpush.bf16.msrb.mxu2 %v1436_v38  ;;  %v2247_v38 = vld [vmem:[%s3558_s8 + $0xe0] sm:$0xff] }
 0x6b5   :  { %1442 = vmatpush.bf16.msrb.mxu2 %v1435_v35 }
 0x6b9   :  { %1443 = vmatpush.bf16.msrb.mxu2 %v1434_v23 }
 0x6bd   :  { %1444 = vmatpush.bf16.msrb.mxu2 %v1433_v32  ;;  %v3438_v32 = vstv %s1489_s5 }
 0x6be   :  { %v1491_v23 = vmul.f32 %v3438_v32, %v3245_v42  ;;  %v1492_v40 = vmul.f32 %v3438_v32, %v3309_v61  ;;  %v1494_v49 = vmul.f32 %v3438_v32, %v3304_v53  ;;  %v1495_v61 = vmul.f32 %v3438_v32, %v3253_v24 }
 0x6bf   :  { %v1496_v14 = vmul.f32 %v3438_v32, %v3298_v45  ;;  %v1497_v53 = vmul.f32 %v3438_v32, %v3256_v16  ;;  %v1498_v6 = vmul.f32 %v3438_v32, %v3292_v63  ;;  %v1499_v45 = vmul.f32 %v3438_v32, %v3259_v39  ;;  %v2250_v39 = vld [vmem:[%s3558_s8 + $0xf8] sm:$0xff] }
 0x6c0   :  { %v1500_v41 = vmul.f32 %v3438_v32, %v3286_v48  ;;  %v1501_v63 = vmul.f32 %v3438_v32, %v3284_v43  ;;  %v1502_v30 = vmul.f32 %v3438_v32, %v3278_v25  ;;  %1744 = vmatpush.bf16.msrb.mxu0 %v2250_v39  ;;  %v2249_v48 = vld [vmem:[%s3558_s8 + $0xf0] sm:$0xff]  ;;  %v2248_v25 = vld [vmem:[%s3558_s8 + $0xe8] sm:$0xff]  ;;  %v1503_v43 = vmul.f32 %v3438_v32, %v3276_v10 }
 0x6c1   :  { %1445 = vmatpush.bf16.msrb.mxu2 %v1432_v18  ;;  %v2235_v18 = vld [vmem:[%s3558_s8 + $0x80] sm:$0xff]  ;;  %v1504_v54 = vmul.f32 %v3438_v32, %v3271_v46  ;;  %v2245_v46 = vld [vmem:[%s3558_s8 + $0xd0] sm:$0xff]  ;;  %v2244_v10 = vld [vmem:[%s3558_s8 + $0xc8] sm:$0xff]  ;;  %v1505_v37 = vmul.f32 %v3438_v32, %v3266_v31  ;;  %v1506_v2 = vmul.f32 %v3438_v32, %v3268_v20 }
 0x6c4   :  { %1745 = vmatpush.bf16.msrb.mxu0 %v2249_v48 }
 0x6c5   :  { %1446 = vmatpush.bf16.msrb.mxu2 %v3345_v60  ;;  %v2236_v60 = vld [vmem:[%s3558_s8 + $0x88] sm:$0xff] }
 0x6c6   :  { %1607 = vmatpush.bf16.msrb.mxu3 %v2236_v60 }
 0x6c8   :  { %2089 = vmatmul.msk.bf16.vlgmr.msrb.gmra.mxu2 %vm3678_vm15, %v3638_v56  ;;  %1746 = vmatpush.bf16.msrb.mxu0 %v2248_v25 }
 0x6ca   :  { %1608 = vmatpush.bf16.msrb.mxu3 %v2235_v18 }
 0x6cc   :  { %1747 = vmatpush.bf16.msrb.mxu0 %v2247_v38 }
 0x6d0   :  { %1748 = vmatpush.bf16.msrb.mxu0 %v2246_v3 }
 0x6d4   :  { %1749 = vmatpush.bf16.msrb.mxu0 %v2245_v46 }
 0x6d8   :  { %2091 = vmatmul.msk.bf16.gmra.mxu2 %vm3679_vm13, %v3638_v56  ;;  %1750 = vmatpush.bf16.msrb.mxu0 %v2244_v10 }
 0x6e8   :  { %2093 = vmatmul.msk.bf16.gmra.mxu2 %vm3680_vm14, %v3638_v56 }
 0x6f8   :  { %2095 = vmatmul.msk.bf16.gmra.mxu2 %vm2966_vm3, %v3638_v56 }
 0x708   :  { %2097 = vmatmul.msk.bf16.gmra.mxu2 %vm2980_vm7, %v3638_v56 }
 0x718   :  { %2099 = vmatmul.msk.bf16.gmra.mxu2 %vm3002_vm9, %v3638_v56 }
 0x728   :  { %2101 = vmatmul.msk.bf16.gmra.mxu2 %vm3035_vm12, %v3638_v56 }
 0x738   :  { %2103 = vmatmul.msk.bf16.gmra.mxu2 %vm3056_vm2, %v3638_v56  ;;  %v1493_v56 = vmul.f32 %v3438_v32, %v3250_v44 }
 0x74b   :  { %v1448_v7 = vpop.f32.mrf.mxu2 }
 0x74c   :  { %v1507_v5 = vadd.f32 %v1491_v23, %v1448_v7  ;;  %v2243_v23 = vld [vmem:[%s3558_s8 + $0xc0] sm:$0xff] }
 0x74d   :  { %1751 = vmatpush.bf16.msrb.mxu0 %v2243_v23 }
 0x753   :  { %v1450_v27 = vpop.f32.mrf.mxu2 }
 0x754   :  { %v1508_v52 = vadd.f32 %v1492_v40, %v1450_v27 }
 0x756   :  { %v1523_v34 = vpack.c.bf16 %v1508_v52, %v1507_v5  ;;  %v2287_v5 = vld [vmem:[%s3559_s9 + $0x2] ss:$0 sm:$0xff] }
 0x758   :  { %1609 = vmatmul.bf16.vlgmr.msrb.gmra.mxu3 %v1523_v34 }
 0x75b   :  { %v1453_v9 = vpop.f32.mrf.mxu2 }
 0x75c   :  { %v1509_v51 = vadd.f32 %v1493_v56, %v1453_v9 }
 0x763   :  { %v1455_v36 = vpop.f32.mrf.mxu2 }
 0x764   :  { %v1510_v19 = vadd.f32 %v1494_v49, %v1455_v36 }
 0x766   :  { %v1524_v22 = vpack.c.bf16 %v1510_v19, %v1509_v51 }
 0x768   :  { %1614 = vmatmul.bf16.gmra.mxu3 %v1524_v22 }
 0x76b   :  { %v1458_v42 = vpop.f32.mrf.mxu2 }
 0x76c   :  { %v1511_v33 = vadd.f32 %v1495_v61, %v1458_v42 }
 0x773   :  { %v1460_v47 = vpop.f32.mrf.mxu2 }
 0x774   :  { %v1512_v58 = vadd.f32 %v1496_v14, %v1460_v47 }
 0x776   :  { %v1525_v11 = vpack.c.bf16 %v1512_v58, %v1511_v33 }
 0x778   :  { %1619 = vmatmul.bf16.gmra.mxu3 %v1525_v11 }
 0x77b   :  { %v1463_v44 = vpop.f32.mrf.mxu2 }
 0x77c   :  { %v1513_v8 = vadd.f32 %v1497_v53, %v1463_v44 }
 0x783   :  { %v1465_v0 = vpop.f32.mrf.mxu2 }
 0x784   :  { %v1514_v12 = vadd.f32 %v1498_v6, %v1465_v0 }
 0x786   :  { %v1526_v50 = vpack.c.bf16 %v1514_v12, %v1513_v8 }
 0x788   :  { %1624 = vmatmul.bf16.gmra.mxu3 %v1526_v50 }
 0x78b   :  { %v1468_v24 = vpop.f32.mrf.mxu2 }
 0x78c   :  { %v1515_v4 = vadd.f32 %v1499_v45, %v1468_v24 }
 0x793   :  { %v1470_v1 = vpop.f32.mrf.mxu2 }
 0x794   :  { %v1516_v26 = vadd.f32 %v1500_v41, %v1470_v1 }
 0x796   :  { %v1527_v17 = vpack.c.bf16 %v1516_v26, %v1515_v4 }
 0x798   :  { %1629 = vmatmul.bf16.gmra.mxu3 %v1527_v17 }
 0x79b   :  { %v1473_v16 = vpop.f32.mrf.mxu2 }
 0x79c   :  { %v1517_v15 = vadd.f32 %v1501_v63, %v1473_v16 }
 0x7a3   :  { %v1475_v59 = vpop.f32.mrf.mxu2 }
 0x7a4   :  { %v1518_v57 = vadd.f32 %v1502_v30, %v1475_v59 }
 0x7a6   :  { %v1528_v55 = vpack.c.bf16 %v1518_v57, %v1517_v15 }
 0x7a8   :  { %1634 = vmatmul.bf16.gmra.mxu3 %v1528_v55 }
 0x7ab   :  { %v1478_v28 = vpop.f32.mrf.mxu2 }
 0x7ac   :  { %v1519_v35 = vadd.f32 %v1503_v43, %v1478_v28 }
 0x7b3   :  { %v1480_v62 = vpop.f32.mrf.mxu2 }
 0x7b4   :  { %v1520_v21 = vadd.f32 %v1504_v54, %v1480_v62 }
 0x7b6   :  { %v1529_v29 = vpack.c.bf16 %v1520_v21, %v1519_v35 }
 0x7b8   :  { %1639 = vmatmul.bf16.gmra.mxu3 %v1529_v29 }
 0x7bb   :  { %v1483_v13 = vpop.f32.mrf.mxu2 }
 0x7bc   :  { %v1521_v18 = vadd.f32 %v1505_v37, %v1483_v13  ;;  %v2288_v37 = vld [vmem:[%s3559_s9 + $0x3] ss:$0 sm:$0xff] }
 0x7c3   :  { %v1485_v60 = vpop.f32.mrf.mxu2 }
 0x7c4   :  { %v1522_v7 = vadd.f32 %v1506_v2, %v1485_v60 }
 0x7c6   :  { %v1530_v40 = vpack.c.bf16 %v1522_v7, %v1521_v18 }
 0x7c8   :  { %1644 = vmatmul.bf16.gmra.mxu3 %v1530_v40 }
 0x7db   :  { %v1610_v27 = vpop.f32.mrf.mxu3 }
 0x7dc   :  { %v1611_v31 = vadd.f32 %v2287_v5, %v1610_v27 }
 0x7de   :  { %v1650_v20 = vmax.f32 %v1611_v31, 0.0 }
 0x7e3   :  { %v1612_v52 = vpop.f32.mrf.mxu3 }
 0x7e4   :  { %v1613_v34 = vadd.f32 %v2287_v5, %v1612_v52 }
 0x7e6   :  { %v1651_v32 = vmax.f32 %v1613_v34, 0.0 }
 0x7e8   :  { %v1666_v9 = vpack.c.bf16 %v1651_v32, %v1650_v20 }
 0x7ea   :  { %1752 = vmatmul.bf16.vlgmr.msrb.gmra.mxu0 %v1666_v9 }
 0x7eb   :  { %v1615_v56 = vpop.f32.mrf.mxu3 }
 0x7ec   :  { %v1616_v49 = vadd.f32 %v2287_v5, %v1615_v56 }
 0x7ee   :  { %v1652_v19 = vmax.f32 %v1616_v49, 0.0 }
 0x7f3   :  { %v1617_v36 = vpop.f32.mrf.mxu3 }
 0x7f4   :  { %v1618_v51 = vadd.f32 %v2287_v5, %v1617_v36 }
 0x7f6   :  { %v1653_v22 = vmax.f32 %v1618_v51, 0.0 }
 0x7f8   :  { %v1667_v42 = vpack.c.bf16 %v1653_v22, %v1652_v19 }
 0x7fa   :  { %1757 = vmatmul.bf16.gmra.mxu0 %v1667_v42 }
 0x7fb   :  { %v1620_v61 = vpop.f32.mrf.mxu3 }
 0x7fc   :  { %v1621_v14 = vadd.f32 %v2287_v5, %v1620_v61 }
 0x7fe   :  { %v1654_v58 = vmax.f32 %v1621_v14, 0.0 }
 0x803   :  { %v1622_v47 = vpop.f32.mrf.mxu3 }
 0x804   :  { %v1623_v33 = vadd.f32 %v2287_v5, %v1622_v47 }
 0x806   :  { %v1655_v11 = vmax.f32 %v1623_v33, 0.0 }
 0x808   :  { %v1668_v44 = vpack.c.bf16 %v1655_v11, %v1654_v58 }
 0x80a   :  { %1762 = vmatmul.bf16.gmra.mxu0 %v1668_v44 }
 0x80b   :  { %v1625_v53 = vpop.f32.mrf.mxu3 }
 0x80c   :  { %v1626_v6 = vadd.f32 %v2287_v5, %v1625_v53 }
 0x80e   :  { %v1656_v12 = vmax.f32 %v1626_v6, 0.0 }
 0x813   :  { %v1627_v0 = vpop.f32.mrf.mxu3 }
 0x814   :  { %v1628_v8 = vadd.f32 %v2287_v5, %v1627_v0 }
 0x816   :  { %v1657_v50 = vmax.f32 %v1628_v8, 0.0 }
 0x818   :  { %v1669_v24 = vpack.c.bf16 %v1657_v50, %v1656_v12 }
 0x81a   :  { %1767 = vmatmul.bf16.gmra.mxu0 %v1669_v24 }
 0x81b   :  { %v1630_v45 = vpop.f32.mrf.mxu3 }
 0x81c   :  { %v1631_v41 = vadd.f32 %v2287_v5, %v1630_v45 }
 0x81e   :  { %v1658_v26 = vmax.f32 %v1631_v41, 0.0 }
 0x823   :  { %v1632_v1 = vpop.f32.mrf.mxu3 }
 0x824   :  { %v1633_v4 = vadd.f32 %v2287_v5, %v1632_v1 }
 0x826   :  { %v1659_v17 = vmax.f32 %v1633_v4, 0.0 }
 0x828   :  { %v1670_v16 = vpack.c.bf16 %v1659_v17, %v1658_v26 }
 0x82a   :  { %1772 = vmatmul.bf16.gmra.mxu0 %v1670_v16 }
 0x82b   :  { %v1635_v63 = vpop.f32.mrf.mxu3 }
 0x82c   :  { %v1636_v30 = vadd.f32 %v2287_v5, %v1635_v63 }
 0x82e   :  { %v1660_v57 = vmax.f32 %v1636_v30, 0.0 }
 0x833   :  { %v1637_v59 = vpop.f32.mrf.mxu3 }
 0x834   :  { %v1638_v15 = vadd.f32 %v2287_v5, %v1637_v59 }
 0x836   :  { %v1661_v55 = vmax.f32 %v1638_v15, 0.0 }
 0x838   :  { %v1671_v39 = vpack.c.bf16 %v1661_v55, %v1660_v57 }
 0x83a   :  { %1777 = vmatmul.bf16.gmra.mxu0 %v1671_v39 }
 0x83b   :  { %v1640_v48 = vpop.f32.mrf.mxu3 }
 0x83c   :  { %v1641_v28 = vadd.f32 %v2287_v5, %v1640_v48 }
 0x83e   :  { %v1662_v54 = vmax.f32 %v1641_v28, 0.0 }
 0x843   :  { %v1642_v25 = vpop.f32.mrf.mxu3 }
 0x844   :  { %v1643_v43 = vadd.f32 %v2287_v5, %v1642_v25 }
 0x846   :  { %v1663_v38 = vmax.f32 %v1643_v43, 0.0 }
 0x848   :  { %v1672_v62 = vpack.c.bf16 %v1663_v38, %v1662_v54 }
 0x84a   :  { %1782 = vmatmul.bf16.gmra.mxu0 %v1672_v62 }
 0x84b   :  { %v1645_v35 = vpop.f32.mrf.mxu3 }
 0x84c   :  { %v1646_v21 = vadd.f32 %v2287_v5, %v1645_v35 }
 0x84e   :  { %v1664_v13 = vmax.f32 %v1646_v21, 0.0 }
 0x853   :  { %v1647_v29 = vpop.f32.mrf.mxu3 }
 0x854   :  { %v1648_v3 = vadd.f32 %v2287_v5, %v1647_v29 }
 0x856   :  { %v1665_v46 = vmax.f32 %v1648_v3, 0.0 }
 0x858   :  { %v1673_v10 = vpack.c.bf16 %v1665_v46, %v1664_v13 }
 0x85a   :  { %1787 = vmatmul.bf16.gmra.mxu0 %v1673_v10 }
 0x867   :  { %v1753_v2 = vpop.f32.mrf.mxu0 }
 0x868   :  { %v1754_v60 = vadd.f32 %v2288_v37, %v1753_v2 }
 0x86a   :  { %1793 = vst [vmem:[%s3562_s12] sm:$0xff] %v1754_v60 }
 0x86f   :  { %v1755_v18 = vpop.f32.mrf.mxu0 }
 0x870   :  { %v1756_v7 = vadd.f32 %v2288_v37, %v1755_v18 }
 0x872   :  { %1794 = vst [vmem:[%s3562_s12 + $0x8] sm:$0xff] %v1756_v7 }
 0x877   :  { %v1758_v23 = vpop.f32.mrf.mxu0 }
 0x878   :  { %v1759_v40 = vadd.f32 %v2288_v37, %v1758_v23 }
 0x87a   :  { %1795 = vst [vmem:[%s3562_s12 + $0x10] sm:$0xff] %v1759_v40 }
 0x87f   :  { %v1760_v27 = vpop.f32.mrf.mxu0 }
 0x880   :  { %v1761_v5 = vadd.f32 %v2288_v37, %v1760_v27 }
 0x882   :  { %1796 = vst [vmem:[%s3562_s12 + $0x18] sm:$0xff] %v1761_v5 }
 0x887   :  { %v1763_v31 = vpop.f32.mrf.mxu0 }
 0x888   :  { %v1764_v52 = vadd.f32 %v2288_v37, %v1763_v31 }
 0x88a   :  { %1797 = vst [vmem:[%s3562_s12 + $0x20] sm:$0xff] %v1764_v52 }
 0x88f   :  { %v1765_v34 = vpop.f32.mrf.mxu0 }
 0x890   :  { %v1766_v20 = vadd.f32 %v2288_v37, %v1765_v34 }
 0x892   :  { %1798 = vst [vmem:[%s3562_s12 + $0x28] sm:$0xff] %v1766_v20 }
 0x897   :  { %v1768_v32 = vpop.f32.mrf.mxu0 }
 0x898   :  { %v1769_v9 = vadd.f32 %v2288_v37, %v1768_v32 }
 0x89a   :  { %1799 = vst [vmem:[%s3562_s12 + $0x30] sm:$0xff] %v1769_v9 }
 0x89f   :  { %v1770_v56 = vpop.f32.mrf.mxu0 }
 0x8a0   :  { %v1771_v49 = vadd.f32 %v2288_v37, %v1770_v56 }
 0x8a2   :  { %1800 = vst [vmem:[%s3562_s12 + $0x38] sm:$0xff] %v1771_v49 }
 0x8a7   :  { %v1773_v36 = vpop.f32.mrf.mxu0 }
 0x8a8   :  { %v1774_v51 = vadd.f32 %v2288_v37, %v1773_v36 }
 0x8aa   :  { %1801 = vst [vmem:[%s3562_s12 + $0x40] sm:$0xff] %v1774_v51 }
 0x8af   :  { %v1775_v19 = vpop.f32.mrf.mxu0 }
 0x8b0   :  { %v1776_v22 = vadd.f32 %v2288_v37, %v1775_v19 }
 0x8b2   :  { %1802 = vst [vmem:[%s3562_s12 + $0x48] sm:$0xff] %v1776_v22 }
 0x8b7   :  { %v1778_v42 = vpop.f32.mrf.mxu0 }
 0x8b8   :  { %v1779_v61 = vadd.f32 %v2288_v37, %v1778_v42 }
 0x8ba   :  { %1803 = vst [vmem:[%s3562_s12 + $0x50] sm:$0xff] %v1779_v61 }
 0x8bf   :  { %v1780_v14 = vpop.f32.mrf.mxu0 }
 0x8c0   :  { %v1781_v47 = vadd.f32 %v2288_v37, %v1780_v14 }
 0x8c2   :  { %1804 = vst [vmem:[%s3562_s12 + $0x58] sm:$0xff] %v1781_v47 }
 0x8c7   :  { %v1783_v33 = vpop.f32.mrf.mxu0 }
 0x8c8   :  { %v1784_v58 = vadd.f32 %v2288_v37, %v1783_v33 }
 0x8ca   :  { %1805 = vst [vmem:[%s3562_s12 + $0x60] sm:$0xff] %v1784_v58 }
 0x8cf   :  { %v1785_v11 = vpop.f32.mrf.mxu0 }
 0x8d0   :  { %v1786_v44 = vadd.f32 %v2288_v37, %v1785_v11 }
 0x8d2   :  { %1806 = vst [vmem:[%s3562_s12 + $0x68] sm:$0xff] %v1786_v44 }
 0x8d7   :  { %v1788_v53 = vpop.f32.mrf.mxu0 }
 0x8d8   :  { %v1789_v6 = vadd.f32 %v2288_v37, %v1788_v53 }
 0x8da   :  { %1807 = vst [vmem:[%s3562_s12 + $0x70] sm:$0xff] %v1789_v6 }
 0x8df   :  { %v1790_v0 = vpop.f32.mrf.mxu0 }
 0x8e0   :  { %v1791_v8 = vadd.f32 %v2288_v37, %v1790_v0 }
 0x8e2   :  { %1808 = vst [vmem:[%s3562_s12 + $0x78] sm:$0xff] %v1791_v8 }
 0x8e3   :  { %1813 = vsyncpa [#allocation3], 1 }

</bundles_post_ra>
